<compile_context>
chip_gen: v5e
topology: v5e:2x2
jax: 0.10.0
libtpu: 0.0.40
codegen_flags: <defaults>
</compile_context>

<pallas_src>
import numpy as np
import jax
import jax.numpy as jnp
from jax import lax
from jax.experimental import pallas as pl
from jax.experimental.pallas import tpu as pltpu

_HALO_BLK = 8  # sublane-aligned halo block height


# --------------------------------------------------------------------------
# Kernel: one (batch, H-tile) block per grid step.
# --------------------------------------------------------------------------
def _make_kernel(apply_leaky: bool):
    def kernel(x_ref, xtop_ref, xbot_ref, w_ref, out_ref):
        # x_ref   : (1, Cin, TH, W)        bf16 main tile
        # xtop_ref: (1, Cin, 8, W)         bf16 8-row block containing row TH*t-1
        # xbot_ref: (1, Cin, 8, W)         bf16 8-row block containing row TH*(t+1)
        # w_ref   : (Cout, 9*Cin+1)        bf16 (BN scale folded, last col = shift)
        # out_ref : (1, Cout, TH, W)       bf16 NCHW output tile
        cin, th, w = x_ref.shape[1], x_ref.shape[2], x_ref.shape[3]
        ht = pl.program_id(1)
        n_ht = pl.num_programs(1)

        x = x_ref[0]                                        # (Cin, TH, W) bf16

        # Halo rows; zeroed at the top/bottom image borders (scalar mask * row).
        top_keep = jnp.where(ht == 0, 0.0, 1.0).astype(x.dtype)
        bot_keep = jnp.where(ht == n_ht - 1, 0.0, 1.0).astype(x.dtype)
        top = xtop_ref[0][:, _HALO_BLK - 1:_HALO_BLK, :] * top_keep   # (Cin,1,W)
        bot = xbot_ref[0][:, 0:1, :] * bot_keep                       # (Cin,1,W)

        # Rows with the 1-row halo, built directly in bf16 (no padded scratch).
        xrows = jnp.concatenate([top, x, bot], axis=1)      # (Cin, TH+2, W)

        # Column-shifted variants: zero padding at the left/right image edges.
        # The 1-lane shifts lower to XLU lane shifts (pltpu.roll-equivalent),
        # and no W+2-wide unaligned buffer is ever stored.
        zcol = jnp.zeros((cin, th + 2, 1), x.dtype)
        xl = jnp.concatenate([zcol, xrows[:, :, :w - 1]], axis=2)  # col j <- j-1
        xr = jnp.concatenate([xrows[:, :, 1:], zcol], axis=2)      # col j <- j+1
        cols = (xl, xrows, xr)                                     # kw = 0, 1, 2

        # im2col: nine 3x3 taps + a ones row that folds the BN shift into K.
        taps = [cols[kw][:, kh:kh + th, :] for kh in range(3) for kw in range(3)]
        taps.append(jnp.ones((1, th, w), x.dtype))
        patches = jnp.concatenate(taps, axis=0)             # (9*Cin+1, TH, W) bf16

        # Single MXU contraction with f32 accumulation:
        #   (Cout, K) x (K, TH, W) -> (Cout, TH, W)
        acc = jnp.einsum('ok,khw->ohw', w_ref[...], patches,
                         preferred_element_type=jnp.float32)

        y = acc
        if apply_leaky:
            y = jnp.where(acc > 0, acc, 0.01 * acc)         # LeakyReLU(0.01), f32
        out_ref[0] = y.astype(out_ref.dtype)

    return kernel


# --------------------------------------------------------------------------
# Host-side glue
# --------------------------------------------------------------------------
def _pick_tile_h(h, target=64):
    best = h
    for th in range(_HALO_BLK, min(h, target) + 1, _HALO_BLK):
        if h % th == 0:
            best = th
    return best


def conv_bn_relu_forward(x_nchw, w_oihw, bn_gamma, bn_beta, bn_mean, bn_var,
                         eps=1e-5, *, tile_h=None, activation='leaky_relu'):
    """ConvBNReLU.forward(x) in eval mode.  x is NCHW; returns bf16 NCHW."""
    if activation not in ('leaky_relu', 'none'):
        raise ValueError("activation must be 'leaky_relu' or 'none'")
    N, Cin, H, W = x_nchw.shape
    Cout = w_oihw.shape[0]
    if H % _HALO_BLK != 0:
        raise ValueError("H must be a multiple of 8 for this kernel")
    if tile_h is None:
        tile_h = _pick_tile_h(H)
    if tile_h % _HALO_BLK != 0 or H % tile_h != 0:
        raise ValueError("tile_h must divide H and be a multiple of 8")
    n_ht = H // tile_h
    thb = tile_h // _HALO_BLK
    hb = H // _HALO_BLK

    # Fold inference BN into the conv: scale -> weights, shift -> extra K column.
    scale = bn_gamma / jnp.sqrt(bn_var + eps)
    shift = bn_beta - bn_mean * scale
    w_fold = w_oihw.astype(jnp.float32) * scale[:, None, None, None]   # (Cout,Cin,3,3)
    w_flat = jnp.transpose(w_fold, (0, 2, 3, 1)).reshape(Cout, 9 * Cin)  # (kh,kw,cin)
    w_aug = jnp.concatenate([w_flat, shift.reshape(Cout, 1)], axis=1)
    w_aug = w_aug.astype(jnp.bfloat16)                                  # (Cout, K)
    K = 9 * Cin + 1

    x_bf16 = x_nchw.astype(jnp.bfloat16)

    # Advisory cost (bf16 activations; halo blocks over-fetch 2*8 rows/tile).
    flops = 2 * N * H * W * K * Cout + 2 * N * H * W * Cout
    bytes_accessed = int(N * Cin * H * W * 2 * (1.0 + 2.0 * _HALO_BLK / tile_h)
                         + Cout * K * 2 + N * Cout * H * W * 2)
    cost = pl.CostEstimate(flops=flops, transcendentals=0,
                           bytes_accessed=bytes_accessed)

    # VMEM budget: double-buffered blocks + in-kernel temporaries, with headroom,
    # capped at 64 MiB (v7x physical VMEM).
    blk_in = (Cin * tile_h * W + 2 * Cin * _HALO_BLK * W) * 2
    blk_w = Cout * K * 2
    blk_out = Cout * tile_h * W * 2
    temps = (3 * Cin * (tile_h + 2) * W * 2      # xrows + two shifted variants
             + 2 * K * tile_h * W * 2            # im2col patches (+ headroom)
             + Cout * tile_h * W * 4)            # f32 accumulator
    vmem_est = 2 * (blk_in + blk_w + blk_out) + temps
    vmem_limit = int(min(64 * 2 ** 20, max(16 * 2 ** 20, 3 * vmem_est)))

    kernel = _make_kernel(activation == 'leaky_relu')

    return pl.pallas_call(
        kernel,
        out_shape=jax.ShapeDtypeStruct((N, Cout, H, W), jnp.bfloat16),
        grid_spec=pltpu.PrefetchScalarGridSpec(
            num_scalar_prefetch=0,
            grid=(N, n_ht),
            in_specs=[
                # main tile
                pl.BlockSpec((1, Cin, tile_h, W), lambda n, t: (n, 0, t, 0)),
                # 8-row block containing the row above the tile (clamped at top)
                pl.BlockSpec((1, Cin, _HALO_BLK, W),
                             lambda n, t: (n, 0, jnp.maximum(t * thb - 1, 0), 0)),
                # 8-row block containing the row below the tile (clamped at bottom)
                pl.BlockSpec((1, Cin, _HALO_BLK, W),
                             lambda n, t: (n, 0, jnp.minimum((t + 1) * thb, hb - 1), 0)),
                # folded weights (+ bias column), resident
                pl.BlockSpec((Cout, K), lambda n, t: (0, 0)),
            ],
            out_specs=pl.BlockSpec((1, Cout, tile_h, W), lambda n, t: (n, 0, t, 0)),
        ),
        compiler_params=pltpu.CompilerParams(
            dimension_semantics=("parallel", "parallel"),
            vmem_limit_bytes=vmem_limit),
        cost_estimate=cost,
    )(x_bf16, x_bf16, x_bf16, w_aug)


def init_params(key, in_chan, out_chan):
    """Parameter init mirroring the module's __init__ (kaiming a=1, BN defaults)."""
    std = 1.0 / np.sqrt(in_chan * 3 * 3)      # kaiming_normal_(a=1): gain=1
    w_oihw = jax.random.normal(key, (out_chan, in_chan, 3, 3), jnp.float32) * std
    gamma = jnp.ones((out_chan,), jnp.float32)
    beta = jnp.zeros((out_chan,), jnp.float32)
    running_mean = jnp.zeros((out_chan,), jnp.float32)
    running_var = jnp.ones((out_chan,), jnp.float32)
    return w_oihw, gamma, beta, running_mean, running_var


def reference_forward(x, w, gamma, beta, mean, var, eps=1e-5, activation='leaky_relu'):
    """Pure-JAX f32 reference for the correctness check."""
    y = lax.conv_general_dilated(x, w, (1, 1), 'SAME',
                                 dimension_numbers=('NCHW', 'OIHW', 'NCHW'))
    inv = gamma / jnp.sqrt(var + eps)
    y = y * inv[None, :, None, None] + (beta - mean * inv)[None, :, None, None]
    if activation == 'leaky_relu':
        y = jnp.where(y > 0, y, 0.01 * y)
    return y


if __name__ == "__main__":
    # Small shapes: batch=2, in_chan=4, out_chan=8, spatial 16x16, tile_h=8
    # (two H-tiles so the halo exchange path is exercised).
    N, Cin, Cout = 2, 4, 8
    H = W = 16

    key = jax.random.PRNGKey(0)
    kx, kw, kg, kb, km, kv = jax.random.split(key, 6)
    x = jax.random.normal(kx, (N, Cin, H, W), jnp.float32)
    w_oihw, gamma, beta, mean, var = init_params(kw, Cin, Cout)
    # Emulate trained BatchNorm affine/running stats so the folded scale+shift
    # path is actually exercised (module __init__ defaults give an identity BN).
    gamma = gamma + 0.2 * jax.random.normal(kg, (Cout,))
    beta = beta + 0.2 * jax.random.normal(kb, (Cout,))
    mean = mean + 0.2 * jax.random.normal(km, (Cout,))
    var = var * jnp.exp(0.2 * jax.random.normal(kv, (Cout,)))

    out = jax.block_until_ready(
        conv_bn_relu_forward(x, w_oihw, gamma, beta, mean, var, tile_h=8))
    ref = jax.block_until_ready(
        reference_forward(x, w_oihw, gamma, beta, mean, var))

    assert out.shape == (N, Cout, H, W)
    assert out.dtype == jnp.bfloat16
    # bf16 activations/weights with f32 accumulation -> small deviation vs f32 ref.
    np.testing.assert_allclose(np.asarray(out, dtype=np.float32), np.asarray(ref),
                               rtol=5e-2, atol=5e-2)
    print("KERNEL_OK")
</pallas_src>

<mosaic_0001>
module attributes {stable_mosaic.version = 11 : i64} {
  func.func @kernel(%arg0: i32, %arg1: i32, %arg2: memref<1x4x8x16xbf16, #tpu.memory_space<vmem>>, %arg3: memref<1x4x8x16xbf16, #tpu.memory_space<vmem>>, %arg4: memref<1x4x8x16xbf16, #tpu.memory_space<vmem>>, %arg5: memref<8x37xbf16, #tpu.memory_space<vmem>>, %arg6: memref<1x8x8x16xbf16, #tpu.memory_space<vmem>>) attributes {dimension_semantics = [#tpu.dimension_semantics<parallel>, #tpu.dimension_semantics<parallel>], iteration_bounds = array<i64: 2, 2>, scalar_prefetch = 0 : i64, scratch_operands = 0 : i64, tpu.core_type = #tpu.core_type<tc>, window_params = [{transform_indices = @transform_0, window_bounds = array<i64: 1, 4, 8, 16>}, {transform_indices = @transform_1, window_bounds = array<i64: 1, 4, 8, 16>}, {transform_indices = @transform_2, window_bounds = array<i64: 1, 4, 8, 16>}, {pipeline_mode = #tpu.pipeline_mode<synchronous>, transform_indices = @transform_3, window_bounds = array<i64: 8, 37>}, {transform_indices = @transform_4, window_bounds = array<i64: 1, 8, 8, 16>}]} {
    %c0 = arith.constant 0 : index
    %c0_0 = arith.constant 0 : index
    %c0_1 = arith.constant 0 : index
    %c0_2 = arith.constant 0 : index
    %0 = vector.load %arg2[%c0, %c0_0, %c0_1, %c0_2] : memref<1x4x8x16xbf16, #tpu.memory_space<vmem>>, vector<1x4x8x16xbf16>
    %1 = vector.shape_cast %0 : vector<1x4x8x16xbf16> to vector<4x8x16xbf16>
    %c0_i32 = arith.constant 0 : i32
    %2 = arith.cmpi eq, %arg1, %c0_i32 : i32
    %cst = arith.constant 0.000000e+00 : f32
    %cst_3 = arith.constant 1.000000e+00 : f32
    %3 = arith.select %2, %cst, %cst_3 : f32
    %4 = arith.truncf %3 : f32 to bf16
    %c1_i32 = arith.constant 1 : i32
    %5 = arith.cmpi eq, %arg1, %c1_i32 : i32
    %cst_4 = arith.constant 0.000000e+00 : f32
    %cst_5 = arith.constant 1.000000e+00 : f32
    %6 = arith.select %5, %cst_4, %cst_5 : f32
    %7 = arith.truncf %6 : f32 to bf16
    %c0_6 = arith.constant 0 : index
    %c0_7 = arith.constant 0 : index
    %c0_8 = arith.constant 0 : index
    %c0_9 = arith.constant 0 : index
    %8 = vector.load %arg3[%c0_6, %c0_7, %c0_8, %c0_9] : memref<1x4x8x16xbf16, #tpu.memory_space<vmem>>, vector<1x4x8x16xbf16>
    %9 = vector.shape_cast %8 : vector<1x4x8x16xbf16> to vector<4x8x16xbf16>
    %10 = vector.extract_strided_slice %9 {offsets = [0, 7, 0], sizes = [4, 1, 16], strides = [1, 1, 1]} : vector<4x8x16xbf16> to vector<4x1x16xbf16>
    %11 = vector.broadcast %4 : bf16 to vector<4x1x16xbf16>
    %12 = arith.mulf %10, %11 : vector<4x1x16xbf16>
    %c0_10 = arith.constant 0 : index
    %c0_11 = arith.constant 0 : index
    %c0_12 = arith.constant 0 : index
    %c0_13 = arith.constant 0 : index
    %13 = vector.load %arg4[%c0_10, %c0_11, %c0_12, %c0_13] : memref<1x4x8x16xbf16, #tpu.memory_space<vmem>>, vector<1x4x8x16xbf16>
    %14 = vector.shape_cast %13 : vector<1x4x8x16xbf16> to vector<4x8x16xbf16>
    %15 = vector.extract_strided_slice %14 {offsets = [0, 0, 0], sizes = [4, 1, 16], strides = [1, 1, 1]} : vector<4x8x16xbf16> to vector<4x1x16xbf16>
    %16 = vector.broadcast %7 : bf16 to vector<4x1x16xbf16>
    %17 = arith.mulf %15, %16 : vector<4x1x16xbf16>
    %18 = tpu.concatenate %12, %1, %17 in 1 : vector<4x1x16xbf16>, vector<4x8x16xbf16>, vector<4x1x16xbf16> -> vector<4x10x16xbf16>
    %cst_14 = arith.constant 0.000000e+00 : bf16
    %19 = vector.broadcast %cst_14 : bf16 to vector<4x10x1xbf16>
    %20 = vector.extract_strided_slice %18 {offsets = [0, 0, 0], sizes = [4, 10, 15], strides = [1, 1, 1]} : vector<4x10x16xbf16> to vector<4x10x15xbf16>
    %21 = tpu.concatenate %19, %20 in 2 : vector<4x10x1xbf16>, vector<4x10x15xbf16> -> vector<4x10x16xbf16>
    %22 = vector.extract_strided_slice %18 {offsets = [0, 0, 1], sizes = [4, 10, 15], strides = [1, 1, 1]} : vector<4x10x16xbf16> to vector<4x10x15xbf16>
    %23 = tpu.concatenate %22, %19 in 2 : vector<4x10x15xbf16>, vector<4x10x1xbf16> -> vector<4x10x16xbf16>
    %24 = vector.extract_strided_slice %21 {offsets = [0, 0, 0], sizes = [4, 8, 16], strides = [1, 1, 1]} : vector<4x10x16xbf16> to vector<4x8x16xbf16>
    %25 = vector.extract_strided_slice %18 {offsets = [0, 0, 0], sizes = [4, 8, 16], strides = [1, 1, 1]} : vector<4x10x16xbf16> to vector<4x8x16xbf16>
    %26 = vector.extract_strided_slice %23 {offsets = [0, 0, 0], sizes = [4, 8, 16], strides = [1, 1, 1]} : vector<4x10x16xbf16> to vector<4x8x16xbf16>
    %27 = vector.extract_strided_slice %21 {offsets = [0, 1, 0], sizes = [4, 8, 16], strides = [1, 1, 1]} : vector<4x10x16xbf16> to vector<4x8x16xbf16>
    %28 = vector.extract_strided_slice %18 {offsets = [0, 1, 0], sizes = [4, 8, 16], strides = [1, 1, 1]} : vector<4x10x16xbf16> to vector<4x8x16xbf16>
    %29 = vector.extract_strided_slice %23 {offsets = [0, 1, 0], sizes = [4, 8, 16], strides = [1, 1, 1]} : vector<4x10x16xbf16> to vector<4x8x16xbf16>
    %30 = vector.extract_strided_slice %21 {offsets = [0, 2, 0], sizes = [4, 8, 16], strides = [1, 1, 1]} : vector<4x10x16xbf16> to vector<4x8x16xbf16>
    %31 = vector.extract_strided_slice %18 {offsets = [0, 2, 0], sizes = [4, 8, 16], strides = [1, 1, 1]} : vector<4x10x16xbf16> to vector<4x8x16xbf16>
    %32 = vector.extract_strided_slice %23 {offsets = [0, 2, 0], sizes = [4, 8, 16], strides = [1, 1, 1]} : vector<4x10x16xbf16> to vector<4x8x16xbf16>
    %cst_15 = arith.constant 1.000000e+00 : bf16
    %33 = vector.broadcast %cst_15 : bf16 to vector<1x8x16xbf16>
    %34 = tpu.concatenate %24, %25, %26, %27, %28, %29, %30, %31, %32, %33 in 0 : vector<4x8x16xbf16>, vector<4x8x16xbf16>, vector<4x8x16xbf16>, vector<4x8x16xbf16>, vector<4x8x16xbf16>, vector<4x8x16xbf16>, vector<4x8x16xbf16>, vector<4x8x16xbf16>, vector<4x8x16xbf16>, vector<1x8x16xbf16> -> vector<37x8x16xbf16>
    %c0_16 = arith.constant 0 : index
    %c0_17 = arith.constant 0 : index
    %35 = vector.load %arg5[%c0_16, %c0_17] : memref<8x37xbf16, #tpu.memory_space<vmem>>, vector<8x37xbf16>
    "tpu.trace_start"() <{level = 10 : i32, message = "ok,khw->ohw"}> : () -> ()
    %cst_18 = arith.constant dense<0.000000e+00> : vector<8x8x16xf32>
    %36 = tpu.matmul %35, %34, %cst_18 {dimension_numbers = #tpu.dot_dimension_numbers<[1], [0], [0], [1, 2], [0, 0, 1, 1, 1, 2], [], []>} : vector<8x37xbf16>, vector<37x8x16xbf16>, vector<8x8x16xf32> -> vector<8x8x16xf32>
    %cst_19 = arith.constant 0.000000e+00 : f32
    "tpu.trace_stop"() : () -> ()
    %37 = vector.broadcast %cst_19 : f32 to vector<8x8x16xf32>
    %38 = arith.cmpf ogt, %36, %37 : vector<8x8x16xf32>
    %cst_20 = arith.constant 0.00999999977 : f32
    %39 = vector.broadcast %cst_20 : f32 to vector<8x8x16xf32>
    %40 = arith.mulf %39, %36 : vector<8x8x16xf32>
    %41 = arith.select %38, %36, %40 : vector<8x8x16xi1>, vector<8x8x16xf32>
    %42 = arith.truncf %41 : vector<8x8x16xf32> to vector<8x8x16xbf16>
    %c0_21 = arith.constant 0 : index
    %c0_22 = arith.constant 0 : index
    %c0_23 = arith.constant 0 : index
    %c0_24 = arith.constant 0 : index
    %43 = vector.load %arg6[%c0_21, %c0_22, %c0_23, %c0_24] : memref<1x8x8x16xbf16, #tpu.memory_space<vmem>>, vector<1x8x8x16xbf16>
    %44 = vector.shape_cast %43 : vector<1x8x8x16xbf16> to vector<8x8x16xbf16>
    %45 = vector.shape_cast %42 : vector<8x8x16xbf16> to vector<1x8x8x16xbf16>
    tpu.vector_store %arg6[%c0_21, %c0_22, %c0_23, %c0_24], %45 {strides = array<i32>} : memref<1x8x8x16xbf16, #tpu.memory_space<vmem>>, vector<1x8x8x16xbf16>,
    return
  }
  func.func @transform_0(%arg0: i32, %arg1: i32) -> (i32, i32, i32, i32) {
    %c0_i32 = arith.constant 0 : i32
    %c0_i32_0 = arith.constant 0 : i32
    %c0_i32_1 = arith.constant 0 : i32
    return %arg0, %c0_i32, %arg1, %c0_i32_0 : i32, i32, i32, i32
  }
  func.func @transform_1(%arg0: i32, %arg1: i32) -> (i32, i32, i32, i32) {
    %c1_i32 = arith.constant 1 : i32
    %0 = arith.muli %arg1, %c1_i32 : i32
    %c1_i32_0 = arith.constant 1 : i32
    %1 = arith.subi %0, %c1_i32_0 : i32
    %c0_i32 = arith.constant 0 : i32
    %2 = arith.maxsi %1, %c0_i32 : i32
    %c0_i32_1 = arith.constant 0 : i32
    %c0_i32_2 = arith.constant 0 : i32
    %c0_i32_3 = arith.constant 0 : i32
    return %arg0, %c0_i32_1, %2, %c0_i32_2 : i32, i32, i32, i32
  }
  func.func @transform_2(%arg0: i32, %arg1: i32) -> (i32, i32, i32, i32) {
    %c1_i32 = arith.constant 1 : i32
    %0 = arith.addi %arg1, %c1_i32 : i32
    %c1_i32_0 = arith.constant 1 : i32
    %1 = arith.muli %0, %c1_i32_0 : i32
    %c1_i32_1 = arith.constant 1 : i32
    %2 = arith.minsi %1, %c1_i32_1 : i32
    %c0_i32 = arith.constant 0 : i32
    %c0_i32_2 = arith.constant 0 : i32
    %c0_i32_3 = arith.constant 0 : i32
    return %arg0, %c0_i32, %2, %c0_i32_2 : i32, i32, i32, i32
  }
  func.func @transform_3(%arg0: i32, %arg1: i32) -> (i32, i32) {
    %c0_i32 = arith.constant 0 : i32
    %c0_i32_0 = arith.constant 0 : i32
    %c0_i32_1 = arith.constant 0 : i32
    return %c0_i32, %c0_i32_0 : i32, i32
  }
  func.func @transform_4(%arg0: i32, %arg1: i32) -> (i32, i32, i32, i32) {
    %c0_i32 = arith.constant 0 : i32
    %c0_i32_0 = arith.constant 0 : i32
    %c0_i32_1 = arith.constant 0 : i32
    return %arg0, %c0_i32, %arg1, %c0_i32_0 : i32, i32, i32, i32
  }
}

</mosaic_0001>

<bundles_post_ra>
// kernel: tpu_custom_call.1
= control target key start
LH: loop header
LB: loop body
LE: loop exit
PB: predicated region body
PF: predicated region fallthrough
CT: control target
= control target key end

     0   :  { %s2971_s0 = inlined_call_operand.hbm [shape: bf16[2,4,16,16], index: 0, kind: input, shape index: {}]   ;;  %s2972_s1 = inlined_call_operand.hbm [shape: bf16[2,4,16,16], index: 1, kind: input, shape index: {}]   ;;  %s2973_s2 = inlined_call_operand.hbm [shape: bf16[2,4,16,16], index: 2, kind: input, shape index: {}]   ;;  %s2974_s3 = inlined_call_operand.hbm [shape: bf16[8,37], index: 3, kind: input, shape index: {}]   ;;  %s2975_s4 = inlined_call_operand.hbm [shape: bf16[2,8,16,16], index: 4, kind: output, shape index: {}]  }
   0x1   :  { %2996 = sst [smem:[#allocation28_spill]] %s2971_s0 }
   0x2   :  { %2997 = sst [smem:[#allocation29_spill]] %s2972_s1 }
   0x3   :  { %2998 = sst [smem:[#allocation30_spill]] %s2973_s2 }
   0x4   :  { %2999 = sst [smem:[#allocation31_spill]] %s2974_s3 }
   0x5   :  { %3000 = sst [smem:[#allocation32_spill]] %s2975_s4 }
   0x6   :  { %9 = vsyncpa [#allocation3], 0 }
   0x7   :  { %11 = vsyncpa [#allocation3 + $0x1], 0 }
   0x8   :  { %12 = vsyncpa [#allocation6], 0 }
   0x9   :  { %14 = vsyncpa [#allocation6 + $0x1], 0 }
   0xa   :  { %15 = vsyncpa [#allocation9], 0 }
   0xb   :  { %16 = vsyncpa [#allocation4], 0 }
   0xc   :  { %18 = vsyncpa [#allocation4 + $0x1], 0  ;;  %s2161_s15 = smov 0   ;;  %s2163_s16 = smov 0  }
   0xd   :  { %s2165_s17 = smov 0   ;;  %s2167_s18 = smov 0  }
   0xe   :  { %s2169_s19 = smov 0   ;;  %s2171_s20 = smov 0  }
   0xf   :  { %s2173_s21 = smov 0   ;;  %s2175_s22 = smov 0  }
  0x10   :  { %s2177_s23 = smov 0   ;;  %s2179_s24 = smov 0  }
  0x11   :  { %s2181_s25 = smov 0   ;;  %s2183_s26 = smov 0  }
  0x12   :  { %s2185_s27 = smov 0   ;;  %s2187_s28 = smov 0  }
  0x13 LB: > { %3001 = sst [smem:[#allocation16_spill]] %s2082_s20  ;;  %s33_s29 = sadd.s32 1, %s2106_s26  ;;  %s2114_s28 = sphi %s2187_s28, %s24_s28   ;;  %s2110_s27 = sphi %s2185_s27, %s3061_s27   ;;  %s2106_s26 = sphi %s2183_s26, %s3050_s26   ;;  %s2102_s25 = sphi %s2181_s25, %s3060_s25   ;;  %s2098_s24 = sphi %s2179_s24, %s3049_s24   ;;  %s2094_s23 = sphi %s2177_s23, %s3059_s23   ;;  %s2090_s22 = sphi %s2175_s22, %s3058_s22   ;;  %s2086_s21 = sphi %s2173_s21, %s3057_s21   ;;  %s2082_s20 = sphi %s2171_s20, %s3046_s20   ;;  %s2078_s19 = sphi %s2169_s19, %s3056_s19   ;;  %s2074_s18 = sphi %s2167_s18, %s3055_s18   ;;  %s2070_s17 = sphi %s2165_s17, %s3054_s17   ;;  %s2066_s16 = sphi %s2163_s16, %s3053_s16   ;;  %s2062_s15 = sphi %s2161_s15, %s3052_s15  }
  0x14   : > { %3002 = sst [smem:[#allocation17_spill]] %s2086_s21  ;;  %s36_s30 = sadd.s32 1, %s2110_s27 }
  0x15   : > { %3003 = sst [smem:[#allocation18_spill]] %s2094_s23  ;;  %p34_p0 = scmp.ge.s32.totalorder %s33_s29, 2 }
  0x16   : > { %3004 = sst [smem:[#allocation19_spill]] %s2098_s24  ;;  %p53_p1 = scmp.eq.s32.totalorder %s2114_s28, 0 }
  0x17   : > { %3005 = sst [smem:[#allocation20_spill]] %s2102_s25  ;;  %s79_s5 = sadd.s32 1, %s2082_s20 }
  0x18   : > { %3006 = sst [smem:[#allocation21_spill]] %s2106_s26  ;;  %s3063_s29 = smov (%p34_p0, %s33_s29), 0 }
  0x19   : > { %3007 = sst [smem:[#allocation22_spill]] %s3063_s29  ;;  %s3065_s30 = smov (!%p34_p0, %s36_s30), %s2110_s27 }
  0x1a   : > { %s41_s6 = ssub.s32 %s2106_s26, %s3063_s29  ;;  %p38_p2 = scmp.ge.s32.totalorder %s3065_s30, 2 }
  0x1b   : > { %p86_p3 = scmp.ne.s32.totalorder %s2082_s20, %s2078_s19  ;;  %p2981_p6 = scmp.lt.s32.totalorder %s2114_s28, 4 }
  0x1c   : > { %s3067_s30 = smov (%p38_p2, %s3065_s30), 0  ;;  %s234_s11 = sand.u32 1, %s2114_s28  }
  0x1d   : > { %3008 = sst [smem:[#allocation23_spill]] %s3067_s30  ;;  %s2246_s7 = ssub.s32 %s2110_s27, %s3067_s30 }
  0x1e   : > { %s2249_s8 = sor.u32 %s41_s6, %s2246_s7  ;;  %p2253_p4 = por %p86_p3, %p53_p1 }
  0x1f   : > { %p43_p5 = scmp.eq.s32.totalorder %s2249_s8, 0  ;;  %p2980_p7 = scmp.eq.s32.totalorder %s2246_s7, 0 }
  0x20   : > { %s236_s12 = sand.u32 1, %s2082_s20   ;;  %s2982_s6 = sshll.u32 %s2110_s27, 5 }
  0x21   : > { %s2266_s13 = scalar_select %p2980_p7, %s2082_s20, %s79_s5  }
  0x22   : > { %s1616_s14 = sshll.u32 %s236_s12, 4  ;;  %s3011_s1 = sld [smem:[#allocation29_spill]] }
  0x23   : > { %3010 = sst [smem:[#allocation24_spill]] %s2266_s13  ;;  %s238_s25 = scalar_lea.vmem [#allocation5], %s1616_s14 }
  0x24   : > { %s250_s24 = sshll.u32 %s238_s25, 4  ;;  %p2278_p8 = pnand %p2981_p6, %p2253_p4  ;;  %s251_s24 = int_to_ptr.vmem [resolvable:$true] %s250_s24 }
  0x25   : > { %s2282_s5 = scalar_lea.sflag [#allocation6], %s234_s11 }
  0x26   : > { %p1836_p10 = pneg %p2278_p8 }
  0x28   : > { %s247_s4 = scalar_lea.hbm %s3011_s1, %s2982_s6  ;;  %s1839_s29 = scalar_lea.hbm %s3011_s1, 64 }
  0x29   : > { %s248_s2 = sshll.u32 %s247_s4, 4  ;;  %s249_s2 = int_to_ptr.hbm [resolvable:$true] %s248_s2 }
  0x2a   : > { %s1832_s12 = sshra.s32 %s249_s2, 4  ;;  %s1833_s12 = int_to_ptr.hbm [resolvable:$true] %s1832_s12 }
  0x2b   : > { %s1834_s13 = scalar_lea.hbm %s1833_s12, 16  ;;  %p1840_p13 = scmp.lt.s32.totalorder %s1833_s12, %s3011_s1 }
  0x2c   : > { %p1835_p9 = scmp.ne.s32.totalorder %s1833_s12, %s1834_s13  ;;  %p1841_p0 = scmp.lt.s32.totalorder %s1839_s29, %s1834_s13 }
  0x2e   : > { %p1837_p11 = pnand %p1836_p10, %p1835_p9  ;;  %p1842_p2 = por %p1841_p0, %p1840_p13 }
  0x30   : > { %p1838_p12 = pneg %p1837_p11 }
  0x32   : > { %p1843_p3 = pnand %p1842_p2, %p1838_p12 }
  0x34   : > { %1846 = shalt.err (!%p1843_p3)
}
  0x35   : > { %s2983_s11 = smov 128   ;;  %s2985_s14 = smov 64  }
  0x36   : > { %s2987_s4 = smov 4   ;;  %s2299_s13 = sadd.s32 4294967295, %s2114_s28  }
  0x37   : > { %1688 = dma.hbm_to_vmem [thread:$0]  (!%p2278_p8), %s249_s2, 256, %s251_s24, %s2282_s5, %s2983_s11, %s2985_s14, %s2987_s4  }
  0x38   : > { %s1607_s12 = sadd.s32 4294967294, %s2114_s28   ;;  %p58_p4 = scmp.ne.s32.totalorder %s2090_s22, %s2086_s21 }
  0x39   : > { %p59_p9 = scmp.eq.s32.totalorder %s2299_s13, 0  ;;  %p92_p10 = scmp.ne.s32.totalorder %s2078_s19, %s2074_s18 }
  0x3a   : > { %p126_p11 = scmp.ne.s32.totalorder %s2066_s16, %s2062_s15  ;;  %p173_p12 = scmp.eq.s32.totalorder %s2299_s13, 3 }
  0x3b   : > { %p2312_p13 = por %p59_p9, %p58_p4  ;;  %p2318_p8 = por %p92_p10, %p59_p9 }
  0x3c   : > { %p2324_p0 = por %p126_p11, %p59_p9  ;;  %p179_p2 = scmp.eq.s32.totalorder %s1607_s12, 3 }
  0x3d   : > { %p1610_p3 = scmp.ge.s32.totalorder %s2114_s28, 1  ;;  %p186_p7 = scmp.lt.s32.totalorder %s2114_s28, 5 }
  0x3e   : > { %p2330_p6 = por %p179_p2, %p58_p4  ;;  %s3019_s3 = sld [smem:[#allocation31_spill]] }
  0x3f   : > { %p2334_p10 = pnand %p1610_p3, %p186_p7  ;;  %s2119_s9 = smov [#allocation8]  }
  0x40   : > { %s3016_s15 = scalar_select %p2330_p6, 1, 0 }
  0x41   : > { %p1678_p11 = pneg %p2334_p10  ;;  %s200_s12 = sshll.u32 %s2119_s9, 4  ;;  %s201_s12 = int_to_ptr.vmem [resolvable:$true] %s200_s12 }
  0x42   : > { %3017 = sst [smem:[#allocation25_spill]] %s3016_s15  ;;  %s45_s6 = sadd.s32 1, %s2094_s23 }
  0x43   : > { %p1679_p4 = pnand %p1678_p11, %p59_p9  ;;  %p52_p7 = scmp.ne.s32.totalorder %s2094_s23, %s2090_s22 }
  0x44   : > { %s198_s30 = sshll.u32 %s3019_s3, 4  ;;  %s211_s11 = sand.u32 1, %s2094_s23   ;;  %s199_s30 = int_to_ptr.hbm [resolvable:$true] %s198_s30 }
  0x45   : > { %1681 = dma.hbm_to_vmem [thread:$0]  (!%p1679_p4), %s199_s30, 64, %s201_s12, [#allocation9]  }
  0x46   : > { %s2352_s25 = scalar_select %p43_p5, %s2094_s23, %s45_s6  }
  0x47   : > { %p54_p2 = por %p53_p1, %p52_p7  ;;  %p2358_p3 = por %p173_p12, %p52_p7 }
  0x48   : > { %3020 = sst [smem:[#allocation26_spill]] %s2352_s25  ;;  %s1613_s9 = sshll.u32 %s211_s11, 4 }
  0x49   : > { %s3021_s29 = scalar_select %p2358_p3, 1, 0 }
  0x4a   : > { %s3023_s14 = sshll.u32 %s2110_s27, 3  ;;  %s215_s30 = scalar_lea.vmem [#allocation2], %s1613_s9 }
  0x4b   : > { %3022 = sst [smem:[#allocation27_spill]] %s3021_s29  ;;  %s219_s4 = sadd.s32 %s2106_s26, %s3023_s14 }
  0x4c   : > { %s1615_s1 = sshll.u32 %s219_s4, 2  ;;  %s224_s8 = sshll.u32 %s215_s30, 4  ;;  %s225_s8 = int_to_ptr.vmem [resolvable:$true] %s224_s8 }
  0x4d   : > { %s3024_s0 = sld [smem:[#allocation28_spill]]  ;;  %p3025_p5 = scmp.lt.s32.totalorder %s2114_s28, 4 }
  0x4e   : > { %s212_s23 = scalar_lea.sflag [#allocation3], %s211_s11  ;;  %s3026_s20 = smov 4  }
  0x4f   : > { %p1683_p12 = pnand %p3025_p5, %p54_p2  ;;  %s3027_s15 = smov 64  }
  0x50   : > { %s3028_s14 = smov 128   ;;  %s113_s4 = sadd.s32 1, %s2070_s17 }
  0x51   : > { %p120_p11 = scmp.ne.s32.totalorder %s2070_s17, %s2066_s16  ;;  %s262_s9 = sand.u32 1, %s2070_s17  }
  0x52   : > { %s1620_s30 = sshll.u32 %s262_s9, 4  ;;  %p3029_p7 = scmp.eq.s32.totalorder %s2246_s7, 0 }
  0x53   : > { %s221_s3 = scalar_lea.hbm %s3024_s0, %s1615_s1  ;;  %p122_p4 = por %p120_p11, %p53_p1 }
  0x54   : > { %s222_s25 = sshll.u32 %s221_s3, 4  ;;  %s264_s6 = scalar_lea.vmem [#allocation7], %s1620_s30  ;;  %s223_s25 = int_to_ptr.hbm [resolvable:$true] %s222_s25 }
  0x55   : > { %1685 = dma.hbm_to_vmem [thread:$0]  (!%p1683_p12), %s223_s25, 256, %s225_s8, %s212_s23, %s3028_s14, %s3027_s15, %s3026_s20  }
  0x56   : > { %s276_s1 = sshll.u32 %s264_s6, 4  ;;  %s3030_s12 = sshll.u32 %s2110_s27, 5  ;;  %s277_s1 = int_to_ptr.vmem [resolvable:$true] %s276_s1 }
  0x57   : > { %s2382_s3 = scalar_select %p3029_p7, %s2070_s17, %s113_s4  }
  0x58   : > { %s2058_s0 = sadd.s32 4, %s3030_s12  ;;  %s3031_s21 = sld [smem:[#allocation30_spill]] }
  0x59   : > { %p3032_p2 = pmov %p3025_p5  ;;  %s2398_s7 = sand.u32 (!%p2334_p10), 1, %s2090_s22  }
  0x5a   : > { %s1624_s25 = sshll.u32 (!%p2334_p10), %s2398_s7, 4  ;;  %s291_s26 = scalar_lea.sflag (!%p2334_p10), [#allocation3], %s2398_s7 }
  0x5b   : > { %p1689_p5 = pnand %p3032_p2, %p122_p4 }
  0x5c   : > { %288 = sbr.rel (%p2334_p10) target bundleno = 746 (0x2ea), region = 36 }
  0x5e   : > { %s273_s29 = scalar_lea.hbm %s3031_s21, %s2058_s0  ;;  %s2402_s0 = scalar_lea.vmem (!%p2334_p10), [#allocation2], %s1624_s25 }
  0x5f   : > { %s274_s23 = sshll.u32 %s273_s29, 4  ;;  %s275_s23 = int_to_ptr.hbm [resolvable:$true] %s274_s23 }
  0x60   : > { %1691 = dma.hbm_to_vmem [thread:$0]  (!%p1689_p5), %s275_s23, 256, %s277_s1, %s2282_s5, %s3028_s14, %s3027_s15, %s3026_s20  }
  0x61   : > { %2037 = dma.done.wait (%p2312_p13), %s291_s26, 256  }
  0x62   : > { %2039 = vsyncadd (%p2312_p13), %s291_s26, 4294967040  ;;  %s300_s20 = sand.u32 1, %s2299_s13   ;;  %s302_s21 = sand.u32 1, %s2078_s19  }
  0x63   : > { %s2410_s5 = sshll.u32 %s302_s21, 4  ;;  %s301_s15 = scalar_lea.sflag [#allocation6], %s300_s20 }
  0x64   : > { %s304_s24 = scalar_lea.vmem [#allocation5], %s2410_s5 }
  0x65   : > { %2041 = dma.done.wait (%p2318_p8), %s301_s15, 256  }
  0x66   : > { %2043 = vsyncadd (%p2318_p8), %s301_s15, 4294967040  ;;  %s312_s29 = sand.u32 1, %s2066_s16  }
  0x67   : > { %s2418_s10 = sshll.u32 %s312_s29, 4 }
  0x68   : > { %s314_s8 = scalar_lea.vmem [#allocation7], %s2418_s10 }
  0x69   : > { %2045 = dma.done.wait (%p2324_p0), %s301_s15, 256  }
  0x6a   : > { %2047 = vsyncadd (%p2324_p0), %s301_s15, 4294967040 }
  0x6b   : > { %2049 = dma.done.wait (%p59_p9), [#allocation9], 64  }
  0x6c   : > { %2051 = vsyncadd (%p59_p9), [#allocation9], 4294967232  ;;  %s3033_s2 = sld [smem:[#allocation19_spill]]  ;;  %v1663_v0 = vld [vmem:[%s2402_s0 + $0x8] sm:$0xff]   ;;  %v1640_v3 = vld [vmem:[%s2402_s0] sm:$0xff]   ;;  %vm541_vm0 = vcmask 1040384  }
  0x6d   : > { %v1645_v1 = vunpack.c.l.b16 %v1663_v0  ;;  %v1646_v2 = vunpack.c.h.b16 %v1663_v0  ;;  %v1642_v4 = vunpack.c.h.b16 %v1640_v3  ;;  %v1664_v5 = vld [vmem:[%s304_s24 + $0x8] sm:$0xff]   ;;  %v1641_v7 = vunpack.c.l.b16 %v1640_v3  ;;  %v1648_v10 = vld [vmem:[%s304_s24] sm:$0xff]   ;;  %s2120_s24 = smov 1   ;;  %s2121_s29 = smov 127  }
  0x6e   : > { %v1665_v8 = vld [vmem:[%s314_s8 + $0x8] sm:$0xff]   ;;  %v1653_v11 = vunpack.c.l.bf16 %v1664_v5  ;;  %v1656_v13 = vld [vmem:[%s314_s8] sm:$0xff]   ;;  %v1654_v17 = vunpack.c.h.bf16 %v1664_v5  ;;  %v1650_v19 = vunpack.c.h.bf16 %v1648_v10  ;;  %v1649_v22 = vunpack.c.l.bf16 %v1648_v10  ;;  %s2125_s10 = smov 64   ;;  %s2126_s8 = smov 96  }
  0x6f   : > { %v2436_v6 = vpack.c.b16 %v1645_v1, %v1645_v1  ;;  %v2440_v9 = vpack.c.b16 %v1646_v2, %v1646_v2  ;;  %v2448_v14 = vpack.c.b16 %v1642_v4, %v1642_v4  ;;  %v473_v15 = vpack.c.b16 %v1641_v7, %v1641_v7 }
  0x70   : > { %v1661_v16 = vunpack.c.l.bf16 %v1665_v8  ;;  %v1662_v18 = vunpack.c.h.bf16 %v1665_v8  ;;  %vm542_vm1 = vsmask.f32 256  ;;  %v1658_v26 = vunpack.c.h.bf16 %v1656_v13 }
  0x71   : > { %v492_v12 = vshrl.u32 %v2436_v6, 16  ;;  %v499_v21 = vshrl.u32 %v2440_v9, 16  ;;  %v478_v23 = vshrl.u32 %v473_v15, 16  ;;  %v495_v25 = vshll.u32 %v2436_v6, 16  ;;  %vm2456_vm4 = vmand %vm541_vm0, %vm542_vm1 }
  0x72   : > { %p367_p1 = scmp.eq.s32.totalorder %s3033_s2, 0  ;;  %p379_p13 = scmp.eq.s32.totalorder %s3033_s2, 1  ;;  %v1657_v27 = vunpack.c.l.bf16 %v1656_v13  ;;  %v502_v30 = vshll.u32 %v2440_v9, 16  ;;  %v485_v31 = vshrl.u32 %v2448_v14, 16  ;;  %vm548_vm2 = vcmask 1044480  }
  0x73   : > { %v494_v29 = vrot.slane %v492_v12, 7  ;;  %vm549_vm3 = vsmask.f32 4352  ;;  %v501_v36 = vrot.slane %v499_v21, 7  ;;  %v480_v38 = vrot.slane %v478_v23, 7 }
  0x74   : > { %s368_s14 = scalar_select %p367_p1, 0.0, 1.0  ;;  %v481_v39 = vshll.u32 %v473_v15, 16  ;;  %vm2463_vm5 = vmand %vm548_vm2, %vm549_vm3  ;;  %v487_v15 = vrot.slane %v485_v31, 7  ;;  %vm589_vm6 = vcmask 121856   ;;  %vm721_vm7 = vcmask 1047556  }
  0x75   : > { %s380_s4 = scalar_select %p379_p13, 0.0, 1.0  ;;  %v497_v60 = vor.u32 %v495_v25, %v494_v29  ;;  %v504_v13 = vor.u32 %v502_v30, %v501_v36  ;;  %vm567_vm8 = vcmask 7168   ;;  %vm1112_vm9 = vcmask 130048  }
  0x76   : > { %p370_p8 = scmp.ne.f32.partialorder %s368_s14, %s368_s14  ;;  %s371_s9 = sshrl.u32 %s368_s14, 16  ;;  %v483_v62 = vor.u32 %v481_v39, %v480_v38  ;;  %vm1122_vm10 = vcmask 261120   ;;  %vm1129_vm11 = vcmask 392192   ;;  %vm1136_vm12 = vcmask 523264  }
  0x77   : > { %s372_s30 = sand.u32 1, %s371_s9  ;;  %p382_p10 = scmp.ne.f32.partialorder %s380_s4, %s380_s4  ;;  %vm1250_vm13 = vcmask 1041408   ;;  %vm1143_vm14 = vcmask 654336   ;;  %vm1251_vm15 = vcmask 1042432   ;;  %vm1150_vm0 = vcmask 785408  }
  0x78   : > { %s373_s18 = sadd.s32 32767, %s372_s30  ;;  %s383_s6 = sshrl.u32 %s380_s4, 16  ;;  %vm1157_vm1 = vcmask 916480   ;;  %vm1246_vm2 = vcmask 302080  }
  0x79   : > { %s374_s1 = sadd.s32 %s373_s18, %s368_s14  ;;  %s384_s13 = sand.u32 1, %s383_s6 }
  0x7a   : > { %s375_s12 = sand.u32 4294901760, %s374_s1  ;;  %s385_s11 = sadd.s32 32767, %s384_s13 }
  0x7b   : > { %s3069_s12 = smov (%p370_p8, %s375_s12), 2143289344  ;;  %s386_s23 = sadd.s32 %s385_s11, %s380_s4 }
  0x7c   : > { %s378_s25 = sshrl.u32 %s3069_s12, 16  ;;  %s387_s26 = sand.u32 4294901760, %s386_s23 }
  0x7d   : > { %s3071_s26 = smov (%p382_p10, %s387_s26), 2143289344  ;;  %s395_s0 = sshll.u32 %s378_s25, 16 }
  0x7e   : > { %s390_s20 = sshrl.u32 %s3071_s26, 16  ;;  %s396_s21 = sor.u32 %s395_s0, %s378_s25 }
  0x7f   : > { %v397_v20 = vstv %s396_s21  ;;  %s416_s5 = sshll.u32 %s390_s20, 16  ;;  %s2127_s14 = smov 32  }
  0x80   : > { %v403_v24 = vunpack.c.l.bf16 %v397_v20  ;;  %s417_s15 = sor.u32 %s416_s5, %s390_s20  ;;  %s2128_s4 = smov 16  }
  0x81   : > { %v418_v28 = vstv %s417_s15  ;;  %s2129_s9 = smov 48   ;;  %s2130_s30 = smov 80  }
  0x82   : > { %v406_v32 = vmul.f32 %v1653_v11, %v403_v24  ;;  %v424_v33 = vunpack.c.l.bf16 %v418_v28  ;;  %v407_v34 = vmul.f32 %v1654_v17, %v403_v24  ;;  %v405_v35 = vmul.f32 %v1650_v19, %v403_v24  ;;  %s2131_s18 = smov 112   ;;  %s3038_s6 = sld [smem:[#allocation20_spill]] }
  0x83   : > { %v404_v37 = vmul.f32 %v1649_v22, %v403_v24  ;;  %v488_v11 = vshll.u32 %v2448_v14, 16  ;;  %s1628_s12 = sshll.u32 %s2398_s7, 5  ;;  %s3039_s25 = sld [smem:[#allocation32_spill]] }
  0x84   : > { %v410_v40 = vpack.c.bf16 %v406_v32, %v406_v32  ;;  %v427_v41 = vmul.f32 %v1661_v16, %v424_v33  ;;  %v411_v42 = vpack.c.bf16 %v407_v34, %v407_v34  ;;  %v428_v43 = vmul.f32 %v1662_v18, %v424_v33  ;;  %s354_s20 = scalar_lea.vmem [#allocation10], %s1628_s12 }
  0x85   : > { %v409_v44 = vpack.c.bf16 %v405_v35, %v405_v35  ;;  %v426_v45 = vmul.f32 %v1658_v26, %v424_v33  ;;  %v408_v46 = vpack.c.bf16 %v404_v37, %v404_v37  ;;  %v425_v47 = vmul.f32 %v1657_v27, %v424_v33  ;;  %s1458_s21 = sshll.u32 %s354_s20, 4  ;;  %s1459_s21 = int_to_ptr.vmem [resolvable:$true] %s1458_s21 }
  0x86   : > { %v431_v48 = vpack.c.bf16 %v427_v41, %v427_v41  ;;  %v439_v49 = vunpack.c.l.b16 %v410_v40  ;;  %v432_v50 = vpack.c.bf16 %v428_v43, %v428_v43  ;;  %v440_v51 = vunpack.c.l.b16 %v411_v42 }
  0x87   : > { %v430_v52 = vpack.c.bf16 %v426_v45, %v426_v45  ;;  %v438_v53 = vunpack.c.l.b16 %v409_v44  ;;  %v429_v54 = vpack.c.bf16 %v425_v47, %v425_v47  ;;  %v437_v55 = vunpack.c.l.b16 %v408_v46 }
  0x88   : > { %v443_v56 = vpack.c.b16 %v439_v49, %v439_v49  ;;  %v515_v57 = vunpack.c.l.b16 %v431_v48  ;;  %v444_v58 = vpack.c.b16 %v440_v51, %v440_v51  ;;  %v516_v59 = vunpack.c.l.b16 %v432_v50  ;;  %s1635_s1 = sshll.u32 %s3038_s6, 4 }
  0x89   : > { %v441_v61 = vpack.c.b16 %v437_v55, %v437_v55  ;;  %v513_v63 = vunpack.c.l.b16 %v429_v54  ;;  %v514_v3 = vunpack.c.l.b16 %v430_v52  ;;  %v442_v6 = vpack.c.b16 %v438_v53, %v438_v53  ;;  %s1455_s13 = sadd.s32 %s3033_s2, %s1635_s1  ;;  %s3040_s0 = smov %s3039_s25 }
  0x8a   : > { %v454_v0 = vshrl.u32 %v443_v56, 16  ;;  %v519_v1 = vpack.c.b16 %v515_v57, %v515_v57  ;;  %v520_v2 = vpack.c.b16 %v516_v59, %v516_v59  ;;  %v458_v5 = vshrl.u32 %v444_v58, 16  ;;  %s1636_s11 = sshll.u32 %s1455_s13, 2 }
  0x8b   : > { %v446_v7 = vshrl.u32 %v441_v61, 16  ;;  %v517_v8 = vpack.c.b16 %v513_v63, %v513_v63  ;;  %v518_v21 = vpack.c.b16 %v514_v3, %v514_v3  ;;  %v450_v23 = vshrl.u32 %v442_v6, 16  ;;  %s1457_s26 = scalar_lea.hbm %s3039_s25, %s1636_s11 }
  0x8c   : > { %v456_v9 = vrot.slane %v454_v0, 3  ;;  %v530_v10 = vshll.u32 %v519_v1, 16  ;;  %v534_v20 = vshll.u32 %v520_v2, 16  ;;  %v460_v22 = vrot.slane %v458_v5, 3  ;;  %s1460_s15 = sshll.u32 %s1457_s26, 4  ;;  %s1461_s15 = int_to_ptr.hbm [resolvable:$true] %s1460_s15 }
  0x8d   : > { %v448_v16 = vrot.slane %v446_v7, 3  ;;  %v522_v17 = vshll.u32 %v517_v8, 16  ;;  %v526_v27 = vshll.u32 %v518_v21, 16  ;;  %v452_v30 = vrot.slane %v450_v23, 3 }
  0x8e   : > { %v532_v18 = vrot.slane %v530_v10, 4  ;;  %v546_v19 = vsel %vm2456_vm4, %v456_v9, %v497_v60  ;;  %v536_v26 = vrot.slane %v534_v20, 4  ;;  %v547_v29 = vsel %vm2456_vm4, %v460_v22, %v504_v13 }
  0x8f   : > { %v524_v24 = vrot.slane %v522_v17, 4  ;;  %v544_v14 = vsel %vm2456_vm4, %v448_v16, %v483_v62  ;;  %v490_v31 = vor.u32 %v488_v11, %v487_v15  ;;  %v528_v33 = vrot.slane %v526_v27, 4 }
  0x90   : > { %v2473_v25 = vsel %vm2463_vm5, %v546_v19, %v532_v18  ;;  %v2486_v32 = vsel %vm2463_vm5, %v547_v29, %v536_v26  ;;  %v2122_v50 = vmov 1983009808   ;;  %v2123_v53 = vmov 1065369472  }
  0x91   : > { %563 = vrot.lane.b32.xlu1 %v2473_v25, %s2120_s24  ;;  %585 = vrot.lane.b32.xlu0 %v2473_v25, %s2121_s29  ;;  %v2479_v28 = vsel %vm2463_vm5, %v544_v14, %v524_v24  ;;  %v545_v34 = vsel %vm2456_vm4, %v452_v30, %v490_v31  ;;  %v647_v48 = vshll.u32 %v2473_v25, 16  ;;  %v724_v51 = vunpack.c.l.s4 %v2122_v50 }
  0x92   : > { %581 = vrot.lane.b32.xlu2 %v2479_v28, %s2121_s29  ;;  %v2494_v35 = vsel %vm2463_vm5, %v545_v34, %v528_v33  ;;  %v633_v42 = vshll.u32 %v2479_v28, 16  ;;  %v631_v49 = vshrl.u32 %v2479_v28, 16  ;;  %v945_v54 = vrot.slane %v2123_v53, 4 }
  0x93   : > { %v640_v45 = vshll.u32 %v2494_v35, 16  ;;  %v638_v57 = vshrl.u32 %v2494_v35, 16  ;;  %v645_v60 = vshrl.u32 %v2473_v25, 16  ;;  %v2516_v61 = vunpack.c.0.s8 %v724_v51 }
  0x94   : > { %v635_v52 = vrot.slane %v633_v42, 1  ;;  %v649_v1 = vrot.slane %v647_v48, 1  ;;  %v2124_v2 = vmov 1934713408   ;;  %v654_v8 = vshll.u32 %v2486_v32, 16 }
  0x95   : > { %v642_v58 = vrot.slane %v640_v45, 1  ;;  %v750_v3 = vunpack.c.l.s4 %v2124_v2  ;;  %v652_v11 = vshrl.u32 %v2486_v32, 16  ;;  %v727_v13 = vrot.slane %v2473_v25, 4 }
  0x96   : > { %v636_v62 = vor.u32 %v635_v52, %v631_v49  ;;  %v1630_v17 = vrot.slane %v2473_v25, 5  ;;  %v650_v18 = vor.u32 %v649_v1, %v645_v60  ;;  %v783_v26 = vrot.slane %v2486_v32, 4 }
  0x97   : > { %v643_v9 = vor.u32 %v642_v58, %v638_v57  ;;  %v2531_v19 = vunpack.c.0.s8 %v750_v3  ;;  %v656_v27 = vrot.slane %v654_v8, 1  ;;  %v777_v51 = vrot.slane %v2494_v35, 4 }
  0x98   : > { %v720_v52 = vrot.slane %v2479_v28, 4  ;;  %v1629_v60 = vrot.slane %v2479_v28, 5 }
  0x99   : > { %565 = vrot.lane.b32.xlu1 %v2486_v32, %s2120_s24  ;;  %587 = vrot.lane.b32.xlu0 %v2486_v32, %s2121_s29  ;;  %v657_v48 = vor.u32 %v656_v27, %v652_v11 }
  0x9a   : > { %583 = vrot.lane.b32.xlu2 %v2494_v35, %s2121_s29  ;;  %s1966_s29 = sshra.s32 %s1461_s15, 4  ;;  %s1967_s29 = int_to_ptr.hbm [resolvable:$true] %s1966_s29 }
  0x9b   : > { %p1973_p11 = scmp.lt.s32.totalorder %s1967_s29, %s3040_s0 }
  0xa1   : > { %561 = vrot.lane.b32.xlu1 %v2494_v35, %s2120_s24  ;;  %559 = vrot.lane.b32.xlu0 %v2479_v28, %s2120_s24  ;;  %s1445_s24 = scalar_lea.sflag [#allocation4], %s2398_s7 }
  0xec   : > { %v582_v36 = vpop.permute.xlu2 %581 }
  0xed   : > { %v2500_v37 = vsel %vm589_vm6, %v582_v36, 0 }
  0xee   : > { %v664_v40 = vshll.u32 %v2500_v37, 16  ;;  %v662_v43 = vshrl.u32 %v2500_v37, 16  ;;  %v714_v56 = vrot.slane %v2500_v37, 1 }
  0xf0   : > { %v666_v44 = vrot.slane %v664_v40, 1  ;;  %v946_v5 = vsel %vm721_vm7, %v945_v54, %v714_v56  ;;  %v1631_v56 = vrot.slane %v2494_v35, 5 }
  0xf1   : > { %v2528_v16 = vperm.slane %v946_v5, %v2516_v61 }
  0xf2   : > { %v667_v55 = vor.u32 %v666_v44, %v662_v43 }
  0xf3   : > { %v958_v34 = vrot.slane %v2528_v16, 4 }
  0xf4   : > { %v584_v38 = vpop.permute.xlu2 %583  ;;  %v833_v4 = vrot.slane %v667_v55, 4 }
  0xf5   : > { %v2503_v39 = vsel %vm589_vm6, %v584_v38, 0  ;;  %v1632_v38 = vrot.slane %v2486_v32, 5 }
  0xf6   : > { %v670_v41 = vshll.u32 %v2503_v39, 16  ;;  %v668_v46 = vshrl.u32 %v2503_v39, 16  ;;  %v834_v20 = vsel %vm721_vm7, %v833_v4, %v636_v62  ;;  %v715_v23 = vrot.slane %v2503_v39, 1 }
  0xf7   : > { %v2541_v33 = vperm.slane %v834_v20, %v2516_v61 }
  0xf8   : > { %v672_v47 = vrot.slane %v670_v41, 1  ;;  %v2550_v44 = vperm.slane %v715_v23, %v2516_v61 }
  0xf9   : > { %v859_v53 = vrot.slane %v2541_v33, 4 }
  0xfa   : > { %v673_v59 = vor.u32 %v672_v47, %v668_v46  ;;  %v984_v58 = vrot.slane %v2550_v44, 4 }
  0xfc   : > { %v889_v10 = vrot.slane %v673_v59, 4 }
  0xfe   : > { %v890_v14 = vsel %vm721_vm7, %v889_v10, %v643_v9 }
  0xff   : > { %v2547_v43 = vperm.slane %v890_v14, %v2516_v61 }
 0x101   : > { %v915_v57 = vrot.slane %v2547_v43, 4 }
 0x103   : > { %v564_v63 = vpop.permute.xlu1 %563  ;;  %v586_v0 = vpop.permute.xlu0 %585 }
 0x104   : > { %v576_v6 = vsel %vm567_vm8, 0, %v564_v63  ;;  %v2521_v7 = vsel %vm589_vm6, %v586_v0, 0 }
 0x105   : > { %v616_v12 = vshll.u32 %v576_v6, 16  ;;  %v676_v15 = vshll.u32 %v2521_v7, 16  ;;  %v696_v21 = vrot.slane %v576_v6, 1  ;;  %v674_v24 = vshrl.u32 %v2521_v7, 16 }
 0x106   : > { %v614_v29 = vshrl.u32 %v576_v6, 16  ;;  %v728_v25 = vsel %vm721_vm7, %v727_v13, %v576_v6  ;;  %v716_v31 = vrot.slane %v2521_v7, 1 }
 0x107   : > { %v678_v22 = vrot.slane %v676_v15, 1  ;;  %v618_v30 = vrot.slane %v616_v12, 1  ;;  %v852_v42 = vsel %vm721_vm7, %v1630_v17, %v696_v21  ;;  %v2554_v46 = vperm.slane %v728_v25, %v2516_v61 }
 0x108   : > { %v955_v50 = vperm.slane %v716_v31, %v2516_v61  ;;  %v2564_v54 = vperm.slane %v852_v42, %v2516_v61 }
 0x109   : > { %v679_v36 = vor.u32 %v678_v22, %v674_v24  ;;  %v619_v32 = vor.u32 %v618_v30, %v614_v29  ;;  %v745_v62 = vrot.slane %v2554_v46, 4 }
 0x10a   : > { %v959_v5 = vsel %vm721_vm7, %v955_v50, %v958_v34  ;;  %v869_v6 = vrot.slane %v2564_v54, 4  ;;  %v956_v9 = vrot.slane %v955_v50, 4 }
 0x10b   : > { %v566_v40 = vpop.permute.xlu1 %565  ;;  %v588_v41 = vpop.permute.xlu0 %587  ;;  %v839_v55 = vrot.slane %v679_v36, 4  ;;  %v739_v2 = vrot.slane %v619_v32, 4  ;;  %v2582_v24 = vperm.slane %v959_v5, %v2531_v19 }
 0x10c   : > { %v579_v45 = vsel %vm567_vm8, 0, %v566_v40  ;;  %v2557_v49 = vsel %vm589_vm6, %v588_v41, 0 }
 0x10d   : > { %v622_v47 = vshll.u32 %v579_v45, 16  ;;  %v682_v59 = vshll.u32 %v2557_v49, 16  ;;  %v620_v63 = vshrl.u32 %v579_v45, 16  ;;  %v697_v1 = vrot.slane %v579_v45, 1 }
 0x10e   : > { %v680_v3 = vshrl.u32 %v2557_v49, 16  ;;  %v840_v8 = vsel %vm721_vm7, %v839_v55, %v650_v18  ;;  %v717_v10 = vrot.slane %v2557_v49, 1  ;;  %v784_v13 = vsel %vm721_vm7, %v783_v26, %v579_v45 }
 0x10f   : > { %v624_v0 = vrot.slane %v622_v47, 1  ;;  %v684_v4 = vrot.slane %v682_v59, 1  ;;  %v908_v22 = vsel %vm721_vm7, %v1632_v38, %v697_v1  ;;  %v740_v18 = vsel %vm721_vm7, %v739_v2, %v2521_v7 }
 0x110   : > { %v2587_v14 = vperm.slane %v840_v8, %v2516_v61  ;;  %v2590_v29 = vperm.slane %v784_v13, %v2516_v61  ;;  %v981_v30 = vperm.slane %v717_v10, %v2516_v61  ;;  %v2594_v34 = vperm.slane %v908_v22, %v2516_v61 }
 0x111   : > { %v685_v15 = vor.u32 %v684_v4, %v680_v3  ;;  %v625_v21 = vor.u32 %v624_v0, %v620_v63  ;;  %v957_v7 = vsel %vm721_vm7, %v956_v9, %v2528_v16  ;;  %v2599_v40 = vperm.slane %v740_v18, %v2516_v61 }
 0x112   : > { %v970_v45 = vrot.slane %v2582_v24, 4  ;;  %v857_v47 = vrot.slane %v2587_v14, 4  ;;  %v801_v59 = vrot.slane %v2590_v29, 4  ;;  %v982_v63 = vrot.slane %v981_v30, 4 }
 0x113   : > { %v562_v11 = vpop.permute.xlu1 %561  ;;  %v560_v12 = vpop.permute.xlu0 %559  ;;  %v895_v27 = vrot.slane %v685_v15, 4  ;;  %v795_v41 = vrot.slane %v625_v21, 4  ;;  %v2607_v16 = vperm.slane %v957_v7, %v2531_v19  ;;  %v925_v1 = vrot.slane %v2594_v34, 4 }
 0x114   : > { %v573_v17 = vsel %vm567_vm8, 0, %v562_v11  ;;  %v570_v20 = vsel %vm567_vm8, 0, %v560_v12  ;;  %v985_v3 = vsel %vm721_vm7, %v981_v30, %v984_v58  ;;  %v2620_v8 = vsel %vm721_vm7, 0, %v970_v45 }
 0x115   : > { %v610_v23 = vshll.u32 %v573_v17, 16  ;;  %v608_v26 = vshrl.u32 %v573_v17, 16  ;;  %v604_v31 = vshll.u32 %v570_v20, 16  ;;  %v602_v36 = vshrl.u32 %v570_v20, 16 }
 0x116   : > { %v694_v38 = vrot.slane %v570_v20, 1  ;;  %v896_v42 = vsel %vm721_vm7, %v895_v27, %v657_v48  ;;  %v695_v50 = vrot.slane %v573_v17, 1  ;;  %v796_v4 = vsel %vm721_vm7, %v795_v41, %v2557_v49 }
 0x117   : > { %v612_v25 = vrot.slane %v610_v23, 1  ;;  %v606_v55 = vrot.slane %v604_v31, 1  ;;  %v2611_v2 = vperm.slane %v896_v42, %v2516_v61  ;;  %v2617_v5 = vperm.slane %v985_v3, %v2531_v19 }
 0x118   : > { %v846_v0 = vsel %vm721_vm7, %v1629_v60, %v694_v38  ;;  %v1061_v60 = vshrl.u32 %v2582_v24, 16  ;;  %v778_v9 = vsel %vm721_vm7, %v777_v51, %v573_v17  ;;  %v902_v11 = vsel %vm721_vm7, %v1631_v56, %v695_v50 }
 0x119   : > { %v613_v32 = vor.u32 %v612_v25, %v608_v26  ;;  %v607_v48 = vor.u32 %v606_v55, %v602_v36  ;;  %v850_v58 = vperm.slane %v846_v0, %v2516_v61  ;;  %v1060_v49 = vpack.i.b16 %v2617_v5, %v2582_v24 }
 0x11a   : > { %v996_v12 = vrot.slane %v2617_v5, 4  ;;  %v968_v13 = vrot.slane %v2607_v16, 4  ;;  %v983_v15 = vsel %vm721_vm7, %v982_v63, %v2550_v44  ;;  %v913_v21 = vrot.slane %v2611_v2, 4 }
 0x11b   : > { %v789_v10 = vrot.slane %v613_v32, 4  ;;  %v733_v35 = vrot.slane %v607_v48, 4  ;;  %v2636_v51 = vperm.slane %v983_v15, %v2531_v19  ;;  %v858_v56 = vsel %vm721_vm7, %v857_v47, %v2541_v33  ;;  %1092 = vrot.lane.b32.xlu2 %v1060_v49, %s2125_s10 }
 0x11c   : > { %v2641_v17 = vperm.slane %v796_v4, %v2516_v61  ;;  %v2644_v22 = vperm.slane %v778_v9, %v2516_v61  ;;  %v906_v23 = vperm.slane %v902_v11, %v2516_v61  ;;  %v2649_v44 = vsel %vm721_vm7, 0, %v996_v12 }
 0x11d   : > { %v790_v18 = vsel %vm721_vm7, %v789_v10, %v2503_v39  ;;  %v722_v27 = vsel %vm721_vm7, %v720_v52, %v570_v20  ;;  %v1066_v26 = vpack.i.b16 %v2649_v44, %v2620_v8  ;;  %v994_v30 = vrot.slane %v2636_v51, 4 }
 0x11e   : > { %v871_v25 = vrot.slane %v850_v58, 4  ;;  %v969_v31 = vsel %vm721_vm7, 0, %v968_v13  ;;  %v1050_v36 = vshrl.u32 %v2636_v51, 16  ;;  %v870_v38 = vsel %vm721_vm7, %v869_v6, %v850_v58 }
 0x11f   : > { %v734_v39 = vsel %vm721_vm7, %v733_v35, %v2500_v37  ;;  %1104 = vrot.lane.b32.xlu1 %v1066_v26, %s2126_s8  ;;  %v995_v28 = vsel %vm721_vm7, 0, %v994_v30  ;;  %v876_v52 = vperm.slane %v870_v38, %v2531_v19  ;;  %v914_v20 = vsel %vm721_vm7, %v913_v21, %v2547_v43 }
 0x120   : > { %v1054_v7 = vpack.i.b16 %v995_v28, %v969_v31  ;;  %v1049_v41 = vshrl.u32 %v2607_v16, 16  ;;  %v1056_v42 = vshrl.u32 %v995_v28, 16  ;;  %v926_v45 = vsel %vm721_vm7, %v925_v1, %v906_v23 }
 0x121   : > { %v927_v6 = vrot.slane %v906_v23, 4  ;;  %v864_v47 = vperm.slane %v858_v56, %v2531_v19  ;;  %v881_v37 = vrot.slane %v876_v52, 4  ;;  %v932_v32 = vperm.slane %v926_v45, %v2531_v19 }
 0x122   : > { %v2676_v50 = vperm.slane %v722_v27, %v2516_v61  ;;  %1080 = vrot.lane.b32.xlu0 %v1054_v7, %s2127_s14  ;;  %v1051_v55 = vpack.i.b16 %v1050_v36, %v1049_v41  ;;  %v1055_v63 = vshrl.u32 %v969_v31, 16  ;;  %v920_v0 = vperm.slane %v914_v20, %v2531_v19 }
 0x123   : > { %v794_v48 = vperm.slane %v790_v18, %v2516_v61  ;;  %v738_v1 = vperm.slane %v734_v39, %v2516_v61  ;;  %v2683_v3 = vsel %vm721_vm7, %v881_v37, %v864_v47  ;;  %v937_v4 = vrot.slane %v932_v32, 4 }
 0x124   : > { %1074 = vrot.lane.b32.xlu2 %v1051_v55, %s2128_s4  ;;  %v1057_v9 = vpack.i.b16 %v1056_v42, %v1055_v63  ;;  %v1062_v10 = vshrl.u32 %v2617_v5, 16  ;;  %v860_v11 = vsel %vm721_vm7, %v2587_v14, %v859_v53  ;;  %v872_v58 = vsel %vm721_vm7, %v2564_v54, %v871_v25 }
 0x125   : > { %v2694_v49 = vsel %vm721_vm7, %v937_v4, %v920_v0  ;;  %v880_v12 = vperm.slane %v872_v58, %v2531_v19  ;;  %v916_v13 = vsel %vm721_vm7, %v2611_v2, %v915_v57  ;;  %v928_v5 = vsel %vm721_vm7, %v2594_v34, %v927_v6 }
 0x126   : > { %v1025_v33 = vshrl.u32 %v2683_v3, 16  ;;  %v1026_v53 = vshrl.u32 %v2694_v49, 16  ;;  %v939_v14 = vrot.slane %v920_v0, 4  ;;  %v936_v54 = vperm.slane %v928_v5, %v2531_v19 }
 0x127   : > { %v757_v15 = vrot.slane %v2599_v40, 4  ;;  %v813_v21 = vrot.slane %v2641_v17, 4  ;;  %v802_v43 = vsel %vm721_vm7, %v801_v59, %v2644_v22  ;;  %1086 = vrot.lane.b32.xlu1 %v1057_v9, %s2129_s9  ;;  %v885_v57 = vrot.slane %v880_v12, 4 }
 0x128   : > { %v1063_v34 = vpack.i.b16 %v1062_v10, %v1061_v60  ;;  %v868_v2 = vperm.slane %v860_v11, %v2531_v19  ;;  %v924_v35 = vperm.slane %v916_v13, %v2531_v19  ;;  %v941_v56 = vrot.slane %v936_v54, 4 }
 0x129   : > { %v746_v23 = vsel %vm721_vm7, %v745_v62, %v2676_v50  ;;  %v883_v18 = vrot.slane %v864_v47, 4  ;;  %v758_v59 = vsel %vm721_vm7, %v757_v15, %v738_v1  ;;  %v814_v27 = vsel %vm721_vm7, %v813_v21, %v794_v48 }
 0x12a   : > { %1098 = vrot.lane.b32.xlu0 %v1063_v34, %s2130_s30  ;;  %v1027_v24 = vpack.i.b16 %v1026_v53, %v1025_v33  ;;  %v2725_v60 = vsel %vm721_vm7, %v932_v32, %v939_v14  ;;  %v886_v26 = vsel %vm721_vm7, %v885_v57, %v868_v2  ;;  %v942_v30 = vsel %vm721_vm7, %v941_v56, %v924_v35 }
 0x12b   : > { %v808_v25 = vperm.slane %v802_v43, %v2531_v19  ;;  %v815_v31 = vrot.slane %v794_v48, 4  ;;  %v759_v62 = vrot.slane %v738_v1, 4  ;;  %v884_v36 = vsel %vm721_vm7, %v876_v52, %v883_v18 }
 0x12c   : > { %1072 = vrot.lane.b32.xlu2 %v1027_v24, %s2128_s4  ;;  %v1068_v38 = vshrl.u32 %v2649_v44, 16  ;;  %v764_v39 = vperm.slane %v758_v59, %v2531_v19  ;;  %v820_v28 = vperm.slane %v814_v27, %v2531_v19  ;;  %v752_v20 = vperm.slane %v746_v23, %v2531_v19 }
 0x12d   : > { %v1030_v7 = vpack.i.b16 %v2725_v60, %v884_v36  ;;  %v1037_v41 = vshrl.u32 %v886_v26, 16  ;;  %v1038_v42 = vshrl.u32 %v942_v30, 16  ;;  %v803_v45 = vrot.slane %v2644_v22, 4 }
 0x12e   : > { %v1067_v6 = vshrl.u32 %v2620_v8, 16  ;;  %v887_v47 = vrot.slane %v868_v2, 4  ;;  %v943_v52 = vrot.slane %v924_v35, 4  ;;  %v827_v37 = vrot.slane %v808_v25, 4 }
 0x12f   : > { %1078 = vrot.lane.b32.xlu1 %v1030_v7, %s2127_s14  ;;  %v760_v44 = vsel %vm721_vm7, %v2599_v40, %v759_v62  ;;  %v816_v32 = vsel %vm721_vm7, %v2641_v17, %v815_v31  ;;  %v747_v55 = vrot.slane %v2676_v50, 4  ;;  %v769_v0 = vrot.slane %v764_v39, 4 }
 0x130   : > { %v1069_v63 = vpack.i.b16 %v1068_v38, %v1067_v6  ;;  %v825_v48 = vrot.slane %v820_v28, 4  ;;  %v1039_v1 = vpack.i.b16 %v1038_v42, %v1037_v41  ;;  %v888_v22 = vsel %vm721_vm7, %v880_v12, %v887_v47 }
 0x131   : > { %v944_v8 = vsel %vm721_vm7, %v936_v54, %v943_v52  ;;  %v771_v4 = vrot.slane %v752_v20, 4  ;;  %v768_v9 = vperm.slane %v760_v44, %v2531_v19  ;;  %v824_v40 = vperm.slane %v816_v32, %v2531_v19 }
 0x132   : > { %1110 = vrot.lane.b32.xlu0 %v1069_v63, %s2131_s18  ;;  %v2751_v17 = vsel %vm721_vm7, %v769_v0, %v752_v20  ;;  %v2754_v50 = vsel %vm721_vm7, %v825_v48, %v808_v25  ;;  %v828_v11 = vsel %vm721_vm7, %v820_v28, %v827_v37  ;;  %v1042_v58 = vpack.i.b16 %v944_v8, %v888_v22 }
 0x133   : > { %v772_v10 = vsel %vm721_vm7, %v764_v39, %v771_v4  ;;  %v748_v12 = vsel %vm721_vm7, %v2554_v46, %v747_v55  ;;  %v804_v13 = vsel %vm721_vm7, %v2590_v29, %v803_v45  ;;  %v1048_v5 = vpack.i.b16 %v2636_v51, %v2607_v16 }
 0x134   : > { %1096 = vrot.lane.b32.xlu2 %v1039_v1, %s2130_s30  ;;  %v1024_v33 = vpack.i.b16 %v2694_v49, %v2683_v3  ;;  %v1000_v53 = vpack.i.b16 %v2754_v50, %v2751_v17  ;;  %v1007_v14 = vshrl.u32 %v772_v10, 16  ;;  %v1008_v54 = vshrl.u32 %v828_v11, 16 }
 0x135   : > { %v773_v15 = vrot.slane %v768_v9, 4  ;;  %v829_v21 = vrot.slane %v824_v40, 4  ;;  %v1036_v43 = vpack.i.b16 %v942_v30, %v886_v26  ;;  %v756_v46 = vperm.slane %v748_v12, %v2531_v19 }
 0x136   : > { %v812_v29 = vperm.slane %v804_v13, %v2531_v19  ;;  %v1009_v16 = vpack.i.b16 %v1008_v54, %v1007_v14  ;;  %v1032_v2 = vshrl.u32 %v2725_v60, 16  ;;  %v1006_v35 = vpack.i.b16 %v828_v11, %v772_v10 }
 0x137   : > { %1102 = vrot.lane.b32.xlu1 %v1042_v58, %s2126_s8  ;;  %v774_v51 = vsel %vm721_vm7, %v773_v15, %v756_v46  ;;  %v1031_v56 = vshrl.u32 %v884_v36, 16  ;;  %v1001_v23 = vshrl.u32 %v2751_v17, 16  ;;  %v1002_v18 = vshrl.u32 %v2754_v50, 16 }
 0x138   : > { %v830_v57 = vsel %vm721_vm7, %v829_v21, %v812_v29  ;;  %v1043_v27 = vshrl.u32 %v888_v22, 16  ;;  %v1044_v24 = vshrl.u32 %v944_v8, 16  ;;  %v775_v26 = vrot.slane %v756_v46, 4 }
 0x139   : > { %v1012_v34 = vpack.i.b16 %v830_v57, %v774_v51  ;;  %v1033_v59 = vpack.i.b16 %v1032_v2, %v1031_v56  ;;  %v831_v30 = vrot.slane %v812_v29, 4  ;;  %v1003_v25 = vpack.i.b16 %v1002_v18, %v1001_v23 }
 0x13a   : > { %1090 = vrot.lane.b32.xlu0 %v1036_v43, %s2125_s10  ;;  %v1013_v31 = vshrl.u32 %v774_v51, 16  ;;  %v1014_v60 = vshrl.u32 %v830_v57, 16  ;;  %v776_v62 = vsel %vm721_vm7, %v768_v9, %v775_v26  ;;  %v1045_v38 = vpack.i.b16 %v1044_v24, %v1043_v27 }
 0x13b   : > { %v832_v36 = vsel %vm721_vm7, %v824_v40, %v831_v30  ;;  %v1019_v39 = vshrl.u32 %v776_v62, 16  ;;  %v2132_v48 = vmov 0.0   ;;  %v2133_v8 = vmov 65535  }
 0x13c   : > { %1082 = vrot.lane.b32.xlu2 %v1009_v16, %s2129_s9  ;;  %v1020_v28 = vshrl.u32 %v832_v36, 16  ;;  %v1015_v20 = vpack.i.b16 %v1014_v60, %v1013_v31  ;;  %v1018_v41 = vpack.i.b16 %v832_v36, %v776_v62  ;;  %v1172_v1 = vperm.slane %v2132_v48, %v2516_v61 }
 0x13d   : > { %v1252_v4 = vsel %vm1250_vm13, 4294967295, %v2133_v8 }
 0x13e   : > { %v1021_v7 = vpack.i.b16 %v1020_v28, %v1019_v39  ;;  %v1177_v10 = vrot.slane %v1172_v1, 4  ;;  %v1253_v11 = vsel %vm1251_vm15, %v1252_v4, 0 }
 0x13f   : > { %1088 = vrot.lane.b32.xlu1 %v1012_v34, %s2125_s10 }
 0x140   : > { %v1179_v58 = vsel %vm721_vm7, %v1172_v1, %v1177_v10  ;;  %v1178_v21 = vsel %vm721_vm7, %v1177_v10, %v1172_v1 }
 0x141   : > { %v1183_v29 = vperm.slane %v1178_v21, %v2531_v19 }
 0x142   : > { %1076 = vrot.lane.b32.xlu0 %v1006_v35, %s2127_s14 }
 0x143   : > { %v1199_v57 = vrot.slane %v1183_v29, 4 }
 0x144   : > { %1084 = vrot.lane.b32.xlu2 %v1033_v59, %s2129_s9 }
 0x145   : > { %v1201_v2 = vsel %vm721_vm7, %v1183_v29, %v1199_v57  ;;  %v1200_v18 = vsel %vm721_vm7, %v1199_v57, %v1183_v29 }
 0x147   : > { %1070 = vrot.lane.b32.xlu1 %v1003_v25, %s2128_s4 }
 0x14a   : > { %1108 = vrot.lane.b32.xlu0 %v1045_v38, %s2131_s18 }
 0x14c   : > { %1094 = vrot.lane.b32.xlu2 %v1015_v20, %s2130_s30  ;;  %v719_v20 = vld [vmem:[#allocation8] sm:$0xf] }
 0x14f   : > { %1106 = vrot.lane.b32.xlu1 %v1021_v7, %s2131_s18 }
 0x152   : > { %1100 = vrot.lane.b32.xlu0 %v1018_v41, %s2126_s8 }
 0x154   : > { %1212 = vrot.lane.b32.xlu2 %v1201_v2, %s2128_s4 }
 0x15c   : > { %1224 = vrot.lane.b32.xlu2 %v1200_v18, %s2125_s10 }
 0x175   : > { %v1093_v42 = vpop.permute.xlu2 %1092 }
 0x17e   : > { %v1075_v45 = vpop.permute.xlu2 %1074 }
 0x17f   : > { %v1121_v37 = vsel %vm1112_vm9, %v1048_v5, %v1075_v45  ;;  %v1187_v5 = vperm.slane %v1179_v58, %v2531_v19 }
 0x181   : > { %v1202_v15 = vrot.slane %v1187_v5, 4 }
 0x183   : > { %v1203_v43 = vsel %vm721_vm7, %v1202_v15, %v1187_v5  ;;  %v1204_v46 = vsel %vm721_vm7, %v1187_v5, %v1202_v15 }
 0x184   : > { %1216 = vrot.lane.b32.xlu0 %v1203_v43, %s2127_s14  ;;  %1220 = vrot.lane.b32.xlu1 %v1204_v46, %s2129_s9 }
 0x185   : > { %1236 = vrot.lane.b32.xlu2 %v1204_v46, %s2131_s18 }
 0x186   : > { %v1073_v52 = vpop.permute.xlu2 %1072 }
 0x187   : > { %v1118_v35 = vsel %vm1112_vm9, %v1024_v33, %v1073_v52 }
 0x18c   : > { %1228 = vrot.lane.b32.xlu0 %v1201_v2, %s2130_s30  ;;  %1232 = vrot.lane.b32.xlu1 %v1203_v43, %s2126_s8 }
 0x18e   : > { %v1097_v22 = vpop.permute.xlu2 %1096 }
 0x191   : > { %v1105_v6 = vpop.permute.xlu1 %1104 }
 0x194   : > { %v1081_v47 = vpop.permute.xlu0 %1080 }
 0x195   : > { %v1128_v32 = vsel %vm1122_vm10, %v1121_v37, %v1081_v47 }
 0x196   : > { %v1083_v51 = vpop.permute.xlu2 %1082 }
 0x199   : > { %v1087_v44 = vpop.permute.xlu1 %1086 }
 0x19a   : > { %v1135_v55 = vsel %vm1129_vm11, %v1128_v32, %v1087_v44 }
 0x19b   : > { %v1142_v0 = vsel %vm1136_vm12, %v1135_v55, %v1093_v42 }
 0x19c   : > { %v1099_v63 = vpop.permute.xlu0 %1098 }
 0x19d   : > { %v1149_v9 = vsel %vm1143_vm14, %v1142_v0, %v1099_v63 }
 0x19e   : > { %v1156_v13 = vsel %vm1150_vm0, %v1149_v9, %v1105_v6  ;;  %v1085_v59 = vpop.permute.xlu2 %1084 }
 0x1a1   : > { %v1079_v40 = vpop.permute.xlu1 %1078 }
 0x1a2   : > { %v1126_v23 = vsel %vm1122_vm10, %v1118_v35, %v1079_v40 }
 0x1a3   : > { %v1133_v24 = vsel %vm1129_vm11, %v1126_v23, %v1085_v59 }
 0x1a4   : > { %v1111_v12 = vpop.permute.xlu0 %1110 }
 0x1a5   : > { %v1165_v14 = vsel %vm1157_vm1, %v1156_v13, %v1111_v12 }
 0x1a6   : > { %v1254_v54 = vand.u32 %v1253_v11, %v1165_v14  ;;  %v1095_v38 = vpop.permute.xlu2 %1094 }
 0x1a8   : > { %1261 = vmatpush.bf16.msra.mxu0 %v1254_v54 }
 0x1a9   : > { %v1103_v16 = vpop.permute.xlu1 %1102 }
 0x1ac   : > { %v1091_v34 = vpop.permute.xlu0 %1090 }
 0x1ad   : > { %v1140_v26 = vsel %vm1136_vm12, %v1133_v24, %v1091_v34 }
 0x1ae   : > { %v1147_v3 = vsel %vm1143_vm14, %v1140_v26, %v1097_v22  ;;  %v1213_v7 = vpop.permute.xlu2 %1212 }
 0x1af   : > { %v1154_v31 = vsel %vm1150_vm0, %v1147_v3, %v1103_v16  ;;  %v1239_v42 = vsel %vm1112_vm9, %v1200_v18, %v1213_v7 }
 0x1b1   : > { %v1089_v56 = vpop.permute.xlu1 %1088 }
 0x1b4   : > { %v1077_v27 = vpop.permute.xlu0 %1076 }
 0x1b6   : > { %v1225_v47 = vpop.permute.xlu2 %1224 }
 0x1b9   : > { %v1071_v49 = vpop.permute.xlu1 %1070 }
 0x1ba   : > { %v1115_v33 = vsel %vm1112_vm9, %v1000_v53, %v1071_v49 }
 0x1bb   : > { %v1124_v30 = vsel %vm1122_vm10, %v1115_v33, %v1077_v27 }
 0x1bc   : > { %v1109_v25 = vpop.permute.xlu0 %1108  ;;  %v1131_v62 = vsel %vm1129_vm11, %v1124_v30, %v1083_v51 }
 0x1bd   : > { %v1162_v60 = vsel %vm1157_vm1, %v1154_v31, %v1109_v25  ;;  %v1138_v36 = vsel %vm1136_vm12, %v1131_v62, %v1089_v56 }
 0x1be   : > { %1262 = vmatpush.bf16.msra.mxu0 %v1162_v60  ;;  %v1145_v17 = vsel %vm1143_vm14, %v1138_v36, %v1095_v38 }
 0x1c1   : > { %v1107_v50 = vpop.permute.xlu1 %1106 }
 0x1c4   : > { %v1101_v39 = vpop.permute.xlu0 %1100 }
 0x1c5   : > { %v1152_v53 = vsel %vm1150_vm0, %v1145_v17, %v1101_v39 }
 0x1c6   : > { %v1159_v28 = vsel %vm1157_vm1, %v1152_v53, %v1107_v50 }
 0x1c7   : > { %1263 = vmatpush.bf16.msra.mxu0 %v1159_v28 }
 0x1ca   : > { %1633 = vmatmul.msk.bf16.vlgmr.msra.gmra.mxu0 %vm1246_vm2, %v719_v20 }
 0x1df   : > { %v1237_v0 = vpop.permute.xlu2 %1236 }
 0x1f6   : > { %v1217_v41 = vpop.permute.xlu0 %1216  ;;  %v1221_v45 = vpop.permute.xlu1 %1220 }
 0x1f7   : > { %v1240_v6 = vsel %vm1122_vm10, %v1239_v42, %v1217_v41 }
 0x1f8   : > { %v1241_v52 = vsel %vm1129_vm11, %v1240_v6, %v1221_v45 }
 0x1f9   : > { %v1242_v37 = vsel %vm1136_vm12, %v1241_v52, %v1225_v47  ;;  %vm1435_vm12 = vcmask 125952  }
 0x1fe   : > { %v1229_v44 = vpop.permute.xlu0 %1228  ;;  %v1233_v55 = vpop.permute.xlu1 %1232 }
 0x1ff   : > { %v1243_v32 = vsel %vm1143_vm14, %v1242_v37, %v1229_v44 }
 0x200   : > { %v1244_v63 = vsel %vm1150_vm0, %v1243_v32, %v1233_v55 }
 0x201   : > { %v1245_v48 = vsel %vm1157_vm1, %v1244_v63, %v1237_v0 }
 0x247   : > { %v1265_v1 = vpop.f32.mrf.mxu0 }
 0x248   : > { %v1266_v22 = vadd.f32 %v1265_v1, %v1245_v48 }
 0x24a   : > { %1276 = vrot.lane.b32.xlu2 %v1266_v22, %s2130_s30  ;;  %1273 = vrot.lane.b32.xlu1 %v1266_v22, %s2126_s8  ;;  %v1293_v58 = vrot.slane %v1266_v22, 4  ;;  %s1968_s8 = scalar_lea.hbm %s1967_s29, 32 }
 0x24b   : > { %1270 = vrot.lane.b32.xlu0 %v1266_v22, %s2131_s18  ;;  %p1969_p9 = scmp.ne.s32.totalorder %s1967_s29, %s1968_s8 }
 0x24d   : > { %p1970_p0 = pnand %p1969_p9, %p2358_p3 }
 0x24f   : > { %v1267_v8 = vpop.f32.mrf.mxu0  ;;  %p1971_p12 = pneg %p1970_p0 }
 0x252   : > { %1285 = vrot.lane.b32.xlu2 %v1266_v22, %s2127_s14  ;;  %1282 = vrot.lane.b32.xlu1 %v1266_v22, %s2129_s9  ;;  %s1972_s9 = scalar_lea.hbm %s3040_s0, 128 }
 0x253   : > { %1279 = vrot.lane.b32.xlu0 %v1266_v22, %s2125_s10  ;;  %p1974_p4 = scmp.lt.s32.totalorder %s1972_s9, %s1968_s8 }
 0x255   : > { %p1975_p7 = por %p1974_p4, %p1973_p11 }
 0x257   : > { %p1976_p2 = pnand %p1975_p7, %p1971_p12 }
 0x25b   : > { %1288 = vrot.lane.b32.xlu0 %v1266_v22, %s2128_s4 }
 0x2a4   : > { %v1277_v4 = vpop.permute.xlu2 %1276 }
 0x2a5   : > { %v1303_v11 = vrot.slane %v1277_v4, 4 }
 0x2ac   : > { %v1286_v46 = vpop.permute.xlu2 %1285 }
 0x2ad   : > { %v1315_v2 = vrot.slane %v1286_v46, 4 }
 0x2bc   : > { %v1274_v9 = vpop.permute.xlu1 %1273 }
 0x2bd   : > { %v1291_v40 = vrot.slane %v1274_v9, 4  ;;  %v1271_v10 = vpop.permute.xlu0 %1270  ;;  %v1294_v13 = vsel %vm721_vm7, %v1274_v9, %v1293_v58 }
 0x2be   : > { %v1305_v12 = vrot.slane %v1271_v10, 4  ;;  %v1304_v5 = vsel %vm721_vm7, %v1303_v11, %v1271_v10  ;;  %v1302_v15 = vperm.slane %v1294_v13, %v2516_v61 }
 0x2bf   : > { %v1292_v14 = vsel %vm721_vm7, %v1291_v40, %v1266_v22  ;;  %v1310_v21 = vperm.slane %v1304_v5, %v2516_v61 }
 0x2c0   : > { %v1306_v54 = vsel %vm721_vm7, %v1277_v4, %v1305_v12  ;;  %v1298_v43 = vperm.slane %v1292_v14, %v2516_v61  ;;  %v1353_v51 = vrot.slane %v1302_v15, 4 }
 0x2c1   : > { %v1314_v29 = vperm.slane %v1306_v54, %v2516_v61  ;;  %v1339_v57 = vrot.slane %v1310_v21, 4 }
 0x2c2   : > { %v1341_v35 = vrot.slane %v1298_v43, 4 }
 0x2c3   : > { %v1351_v56 = vrot.slane %v1314_v29, 4  ;;  %v1340_v27 = vsel %vm721_vm7, %v1339_v57, %v1298_v43  ;;  %v1354_v24 = vsel %vm721_vm7, %v1314_v29, %v1353_v51 }
 0x2c4   : > { %v1283_v23 = vpop.permute.xlu1 %1282  ;;  %v1342_v3 = vsel %vm721_vm7, %v1310_v21, %v1341_v35  ;;  %v1346_v31 = vperm.slane %v1340_v27, %v2531_v19  ;;  %v1362_v60 = vperm.slane %v1354_v24, %v2531_v19 }
 0x2c5   : > { %v1280_v16 = vpop.permute.xlu0 %1279  ;;  %v1329_v49 = vrot.slane %v1283_v23, 4  ;;  %v1352_v33 = vsel %vm721_vm7, %v1351_v56, %v1302_v15  ;;  %v1350_v38 = vperm.slane %v1342_v3, %v2531_v19 }
 0x2c6   : > { %v1317_v34 = vrot.slane %v1280_v16, 4  ;;  %v1316_v59 = vsel %vm721_vm7, %v1315_v2, %v1280_v16  ;;  %v1358_v50 = vperm.slane %v1352_v33, %v2531_v19  ;;  %v1389_v42 = vrot.slane %v1346_v31, 4 }
 0x2c7   : > { %v1322_v30 = vperm.slane %v1316_v59, %v2516_v61  ;;  %v1401_v45 = vrot.slane %v1362_v60, 4  ;;  %v1393_v47 = vrot.slane %v1350_v38, 4 }
 0x2c8   : > { %v1318_v18 = vsel %vm721_vm7, %v1286_v46, %v1317_v34  ;;  %v1397_v0 = vrot.slane %v1358_v50, 4 }
 0x2c9   : > { %v1326_v26 = vperm.slane %v1318_v18, %v2516_v61  ;;  %v1365_v28 = vrot.slane %v1322_v30, 4 }
 0x2cb   : > { %v1377_v39 = vrot.slane %v1326_v26, 4 }
 0x2cd   : > { %v1289_v25 = vpop.permute.xlu0 %1288 }
 0x2ce   : > { %v1327_v62 = vrot.slane %v1289_v25, 4  ;;  %v1330_v36 = vsel %vm721_vm7, %v1289_v25, %v1329_v49 }
 0x2cf   : > { %v1338_v17 = vperm.slane %v1330_v36, %v2516_v61 }
 0x2d0   : > { %v1328_v53 = vsel %vm721_vm7, %v1327_v62, %v1283_v23 }
 0x2d1   : > { %v1334_v20 = vperm.slane %v1328_v53, %v2516_v61  ;;  %v1375_v7 = vrot.slane %v1338_v17, 4  ;;  %v1378_v41 = vsel %vm721_vm7, %v1338_v17, %v1377_v39 }
 0x2d2   : > { %v1386_v6 = vperm.slane %v1378_v41, %v2531_v19 }
 0x2d3   : > { %v1363_v52 = vrot.slane %v1334_v20, 4  ;;  %v1366_v37 = vsel %vm721_vm7, %v1334_v20, %v1365_v28  ;;  %v1376_v44 = vsel %vm721_vm7, %v1375_v7, %v1326_v26 }
 0x2d4   : > { %v1374_v32 = vperm.slane %v1366_v37, %v2531_v19  ;;  %v1382_v55 = vperm.slane %v1376_v44, %v2531_v19  ;;  %v1399_v63 = vrot.slane %v1386_v6, 4  ;;  %v1402_v61 = vsel %vm721_vm7, %v1386_v6, %v1401_v45 }
 0x2d5   : > { %v1364_v48 = vsel %vm721_vm7, %v1363_v52, %v1322_v30  ;;  %vm1410_vm3 = vcmp.gt.f32.partialorder %v1402_v61, 0.0  ;;  %v1418_v1 = vmul.f32 0.01, %v1402_v61 }
 0x2d6   : > { %v1370_v22 = vperm.slane %v1364_v48, %v2531_v19  ;;  %v1391_v8 = vrot.slane %v1374_v32, 4  ;;  %v1394_v4 = vsel %vm721_vm7, %v1374_v32, %v1393_v47  ;;  %v1395_v9 = vrot.slane %v1382_v55, 4 }
 0x2d7   : > { %v1398_v40 = vsel %vm721_vm7, %v1382_v55, %v1397_v0  ;;  %v1400_v10 = vsel %vm721_vm7, %v1399_v63, %v1362_v60  ;;  %vm1406_vm4 = vcmp.gt.f32.partialorder %v1394_v4, 0.0  ;;  %v1414_v11 = vmul.f32 0.01, %v1394_v4 }
 0x2d8   : > { %v1387_v58 = vrot.slane %v1370_v22, 4  ;;  %v1390_v12 = vsel %vm721_vm7, %v1370_v22, %v1389_v42  ;;  %v1392_v13 = vsel %vm721_vm7, %v1391_v8, %v1350_v38  ;;  %v1396_v5 = vsel %vm721_vm7, %v1395_v9, %v1358_v50 }
 0x2d9   : > { %vm1404_vm5 = vcmp.gt.f32.partialorder %v1390_v12, 0.0  ;;  %vm1405_vm6 = vcmp.gt.f32.partialorder %v1392_v13, 0.0  ;;  %vm1407_vm8 = vcmp.gt.f32.partialorder %v1396_v5, 0.0  ;;  %vm1408_vm9 = vcmp.gt.f32.partialorder %v1398_v40, 0.0 }
 0x2da   : > { %v1388_v19 = vsel %vm721_vm7, %v1387_v58, %v1346_v31  ;;  %vm1409_vm10 = vcmp.gt.f32.partialorder %v1400_v10, 0.0  ;;  %v1412_v14 = vmul.f32 0.01, %v1390_v12  ;;  %v1413_v54 = vmul.f32 0.01, %v1392_v13 }
 0x2db   : > { %vm1403_vm11 = vcmp.gt.f32.partialorder %v1388_v19, 0.0  ;;  %v1411_v15 = vmul.f32 0.01, %v1388_v19  ;;  %v1415_v21 = vmul.f32 0.01, %v1396_v5  ;;  %v1422_v43 = vsel %vm1406_vm4, %v1394_v4, %v1414_v11 }
 0x2dc   : > { %v1416_v46 = vmul.f32 0.01, %v1398_v40  ;;  %v1417_v29 = vmul.f32 0.01, %v1400_v10  ;;  %v1420_v16 = vsel %vm1404_vm5, %v1390_v12, %v1412_v14  ;;  %v1421_v51 = vsel %vm1405_vm6, %v1392_v13, %v1413_v54 }
 0x2dd   : > { %v1419_v57 = vsel %vm1403_vm11, %v1388_v19, %v1411_v15  ;;  %v1423_v34 = vsel %vm1407_vm8, %v1396_v5, %v1415_v21  ;;  %v1428_v2 = vpack.c.bf16 %v1420_v16, %v1420_v16  ;;  %v1429_v18 = vpack.c.bf16 %v1421_v51, %v1421_v51 }
 0x2de   : > { %v1424_v35 = vsel %vm1408_vm9, %v1398_v40, %v1416_v46  ;;  %v1425_v56 = vsel %vm1409_vm10, %v1400_v10, %v1417_v29  ;;  %v1427_v23 = vpack.c.bf16 %v1419_v57, %v1419_v57  ;;  %v1426_v59 = vsel %vm1410_vm3, %v1402_v61, %v1418_v1 }
 0x2df   : > { %v1430_v27 = vpack.c.bf16 %v1422_v43, %v1422_v43  ;;  %v1431_v24 = vpack.c.bf16 %v1423_v34, %v1423_v34  ;;  %1437 = vst.msk [vmem:[%s354_s20 + $0x4] sm:$0xf] %vm1435_vm12, %v1428_v2  ;;  %v1432_v26 = vpack.c.bf16 %v1424_v35, %v1424_v35  ;;  %v1433_v3 = vpack.c.bf16 %v1425_v56, %v1425_v56 }
 0x2e0   : > { %1436 = vst.msk [vmem:[%s354_s20] sm:$0xf] %vm1435_vm12, %v1427_v23  ;;  %v1434_v49 = vpack.c.bf16 %v1426_v59, %v1426_v59 }
 0x2e1   : > { %1438 = vst.msk [vmem:[%s354_s20 + $0x8] sm:$0xf] %vm1435_vm12, %v1429_v18 }
 0x2e2   : > { %1439 = vst.msk [vmem:[%s354_s20 + $0xc] sm:$0xf] %vm1435_vm12, %v1430_v27 }
 0x2e3   : > { %1440 = vst.msk [vmem:[%s354_s20 + $0x10] sm:$0xf] %vm1435_vm12, %v1431_v24 }
 0x2e4   : > { %1441 = vst.msk [vmem:[%s354_s20 + $0x14] sm:$0xf] %vm1435_vm12, %v1432_v26 }
 0x2e5   : > { %1442 = vst.msk [vmem:[%s354_s20 + $0x18] sm:$0xf] %vm1435_vm12, %v1433_v3 }
 0x2e6   : > { %1443 = vst.msk [vmem:[%s354_s20 + $0x1c] sm:$0xf] %vm1435_vm12, %v1434_v49 }
 0x2e7   : > { %1979 = shalt.err (!%p1976_p2)
}
 0x2e8   : > { %s2134_s7 = smov 128   ;;  %s2135_s6 = smov 4  }
 0x2e9   : > { %1676 = dma.vmem_to_hbm [thread:$0]  (%p2358_p3), %s1459_s21, 512, %s1461_s15, %s1445_s24, %s2125_s10, %s2134_s7, %s2135_s6  }
 0x2ea PF: > { %s3042_s1 = sld [smem:[#allocation17_spill]]  ;;  %p1699_p5 = scmp.ge.s32.totalorder %s2114_s28, 2 }
 0x2ec   : > { %p1693_p1 = pnand %p1699_p5, %p2330_p6 }
 0x2ee   : > { %p1694_p13 = pneg %p1693_p1 }
 0x2f0   : > { %s1475_s12 = sand.u32 1, %s3042_s1  }
 0x2f1   : > { %s1476_s11 = scalar_lea.sflag [#allocation4], %s1475_s12 }
 0x2f2   : > { %2053 = dma.done.wait (%p1694_p13), %s1476_s11, 512  }
 0x2f3   : > { %2055 = vsyncadd (%p1694_p13), %s1476_s11, 4294966784  ;;  %s24_s28 = sadd.s32 1, %s2114_s28   ;;  %s3045_s10 = sld [smem:[#allocation16_spill]] }
 0x2f4   : > { %p2924_p8 = scmp.ge.s32.totalorder %s24_s28, 6   ;;  %s3046_s20 = sld [smem:[#allocation24_spill]] }
 0x2f5   : > { %s3047_s23 = sld [smem:[#allocation18_spill]]  ;;  %s3052_s15 = smov %s2066_s16 }
 0x2f6   : > { %s3048_s25 = sld [smem:[#allocation26_spill]]  ;;  %s3053_s16 = smov %s2070_s17 }
 0x2f7   : > { %s3049_s24 = sld [smem:[#allocation21_spill]]  ;;  %s3054_s17 = smov %s2382_s3 }
 0x2f8   : > { %s3050_s26 = sld [smem:[#allocation22_spill]]  ;;  %s3055_s18 = smov %s2078_s19 }
 0x2f9   : > { %s3051_s5 = sld [smem:[#allocation23_spill]]  ;;  %s3056_s19 = smov %s3045_s10 }
 0x2fa   : > { %s3057_s21 = smov %s2090_s22 }
 0x2fb   : > { %s3058_s22 = smov %s3047_s23  ;;  %23 = sbr.rel (!%p2924_p8) target bundleno = 19 (0x13), region = 109 }
 0x2fc   : > { %s3059_s23 = smov %s3048_s25  ;;  %s3060_s25 = smov %s2110_s27 }
 0x2ff   : > { %s3061_s27 = smov %s3051_s5 }
 0x300   :  { %1482 = vsyncpa [#allocation3], 1 }
 0x301   :  { %1484 = vsyncpa [#allocation3 + $0x1], 1 }
 0x302   :  { %1485 = vsyncpa [#allocation6], 1 }
 0x303   :  { %1487 = vsyncpa [#allocation6 + $0x1], 1 }
 0x304   :  { %1488 = vsyncpa [#allocation9], 1 }
 0x305   :  { %1489 = vsyncpa [#allocation4], 1 }
 0x306   :  { %1491 = vsyncpa [#allocation4 + $0x1], 1 }

</bundles_post_ra>
